<compile_context>
chip_gen: v7x
topology: tpu7x:2x2x1
jax: 0.10.0
libtpu: 0.0.40
codegen_flags: <defaults>
</compile_context>

<pallas_src>
import functools

import jax
import jax.numpy as jnp
from jax.experimental import pallas as pl
from jax.experimental.pallas import tpu as pltpu


# --------------------------------------------------------------------------
# helpers
# --------------------------------------------------------------------------
def _layernorm(v, g, b, eps):
    mu = jnp.mean(v, axis=-1, keepdims=True)
    var = jnp.mean((v - mu) ** 2, axis=-1, keepdims=True)
    return (v - mu) * jax.lax.rsqrt(var + eps) * g + b


def _seq_tile(S, target):
    """Largest sequence tile <= target that divides S and is a multiple of 8
    (or the full S for small / awkward sequence lengths)."""
    if S <= target:
        return S
    for cand in range(target, 7, -8):
        if S % cand == 0 and cand % 8 == 0:
            return cand
    return S


def _vmem_spec():
    # Whole operand resident in VMEM, single-buffered (grid-invariant params).
    return pl.BlockSpec(memory_space=pltpu.MemorySpace.VMEM)


def _hw_defaults():
    """Per-generation tiling / VMEM budget (v7x has 64 MiB VMEM per core)."""
    vmem_cap = 128 * 1024 * 1024
    try:
        info = pltpu.get_tpu_info()
        vmem_cap = int(getattr(info, "vmem_capacity_bytes", vmem_cap))
    except Exception:
        pass
    if vmem_cap <= 64 * 1024 * 1024:
        # v7x-class: half the VMEM, 2 TCs/chip.  Smaller tiles, conservative
        # VMEM budget, and megacore split on the batch axis only (q-block axis
        # marked "arbitrary") so both cores don't duplicate full-S K/V.
        return dict(vmem_limit_bytes=48 * 1024 * 1024, ts_a=256, ts_b=128,
                    attn_seq_semantics="arbitrary")
    # v5e / v6e: 128 MiB VMEM -> big tiles, ~100 MiB scoped budget.
    return dict(vmem_limit_bytes=100 * 1024 * 1024, ts_a=512, ts_b=256,
                attn_seq_semantics="parallel")


# --------------------------------------------------------------------------
# one-time (load-time) parameter preparation
# --------------------------------------------------------------------------
def prepare_mlcd_params(layer_params):
    """Fuse Wq/Wk/Wv into one (D, 3D) weight and cast all matmul weights to
    bf16 ONCE (instead of per layer per forward)."""
    bf16 = jnp.bfloat16
    f32 = jnp.float32
    prepped = []
    for p in layer_params:
        (ln1_g, ln1_b, wq, bq, wk, bk, wv, bv, wo, bo,
         ln2_g, ln2_b, wfc1, bfc1, wfc2, bfc2) = p
        wqkv = jnp.concatenate([wq, wk, wv], axis=1).astype(bf16)      # (D, 3D)
        bqkv = jnp.concatenate(
            [jnp.reshape(bq, (1, -1)), jnp.reshape(bk, (1, -1)),
             jnp.reshape(bv, (1, -1))], axis=1).astype(f32)            # (1, 3D)
        prepped.append((
            jnp.reshape(ln1_g, (1, -1)).astype(f32),
            jnp.reshape(ln1_b, (1, -1)).astype(f32),
            wqkv, bqkv,
            wo.astype(bf16), jnp.reshape(bo, (1, -1)).astype(f32),
            jnp.reshape(ln2_g, (1, -1)).astype(f32),
            jnp.reshape(ln2_b, (1, -1)).astype(f32),
            wfc1.astype(bf16), jnp.reshape(bfc1, (1, -1)).astype(f32),
            wfc2.astype(bf16), jnp.reshape(bfc2, (1, -1)).astype(f32)))
    return prepped


# --------------------------------------------------------------------------
# Stage A: LayerNorm1 + fused QKV projection + RoPE   (grid = (B, seq blocks))
# --------------------------------------------------------------------------
def qkv_rope_kernel(x_ref, cos_ref, sin_ref, ln_g_ref, ln_b_ref,
                    wqkv_ref, bqkv_ref,
                    q_ref, k_ref, v_ref,
                    *, num_heads, head_dim, eps, scale):
    x = x_ref[0].astype(jnp.float32)                           # (TS, D)
    h = _layernorm(x, ln_g_ref[...], ln_b_ref[...], eps)       # fp32 LN
    hb = h.astype(jnp.bfloat16)                                # bf16 MXU input

    D = num_heads * head_dim
    # Single fused (TS, D) x (D, 3D) MXU matmul (one weight DMA, one push).
    qkv = jnp.dot(hb, wqkv_ref[...],
                  preferred_element_type=jnp.float32) + bqkv_ref[...]
    q = qkv[:, :D]
    k = qkv[:, D:2 * D]
    v = qkv[:, 2 * D:]

    ts = x.shape[0]
    half = head_dim // 2
    cos = cos_ref[...][:, None, :]                             # (TS, 1, hd)
    sin = sin_ref[...][:, None, :]

    def rope(t):
        # Batched over all heads at once: (TS, H, hd).
        # TODO(synk): lane-aligned rotate-half (pre-permuted Q/K column layout
        # or interleaved pairs + pltpu.roll) would avoid the sub-128-lane
        # half slices; kept as-is since this VPU/XLU work hides under the QKV
        # MXU matmul and the permuted layouts risk regressing the scores
        # matmul / lowering at small head_dim.
        t = t.reshape(ts, num_heads, head_dim)
        t1 = t[..., :half]
        t2 = t[..., half:]
        rot = jnp.concatenate([-t2, t1], axis=-1)
        return (t * cos + rot * sin).reshape(ts, num_heads * head_dim)

    # Fold the softmax scale into Q (O(S*hd) multiplies instead of O(S^2)).
    q_ref[0] = (rope(q) * scale).astype(q_ref.dtype)
    k_ref[0] = rope(k).astype(k_ref.dtype)
    v_ref[0] = v.astype(v_ref.dtype)


# --------------------------------------------------------------------------
# Stage B: attention core + out_proj + residual + LN2 + MLP + residual
#          (grid = (B, q blocks))
# --------------------------------------------------------------------------
def attn_mlp_kernel(x_ref, q_ref, k_ref, v_ref, wo_ref, bo_ref,
                    ln2_g_ref, ln2_b_ref, w1_ref, b1_ref, w2_ref, b2_ref,
                    o_ref, *, num_heads, head_dim, eps, approx_softmax):
    tq = q_ref.shape[1]
    s = k_ref.shape[1]

    q = q_ref[0].reshape(tq, num_heads, head_dim)              # bf16, pre-scaled
    k = k_ref[0].reshape(s, num_heads, head_dim)               # bf16
    v = v_ref[0].reshape(s, num_heads, head_dim)               # bf16

    # Batched per-head matmuls on the MXU (no per-head python loop).
    scores = jnp.einsum('qhd,khd->hqk', q, k,
                        preferred_element_type=jnp.float32)    # (H, TQ, S) f32
    m = jnp.max(scores, axis=-1, keepdims=True)
    p = jnp.exp(scores - m)
    l = jnp.sum(p, axis=-1, keepdims=True)
    if approx_softmax:
        p = p * pl.reciprocal(l, approx=True)                  # EUP reciprocal
    else:
        p = p / l                                              # exact parity

    o = jnp.einsum('hqk,khd->qhd', p.astype(jnp.bfloat16), v,
                   preferred_element_type=jnp.float32)         # (TQ, H, hd)
    # TODO(synk): a transpose-free out_proj (einsum('qhd,hde->qe') with wo
    # reshaped to (H, hd, D)) would drop this relayout, but multi-contracting
    # dot_general is not reliably lowered by Mosaic; keep reshape + one big
    # (TQ,D)x(D,D) MXU matmul.
    o = o.reshape(tq, num_heads * head_dim).astype(jnp.bfloat16)
    attn = jnp.dot(o, wo_ref[...],
                   preferred_element_type=jnp.float32) + bo_ref[...]

    y = x_ref[0].astype(jnp.float32) + attn                    # residual 1 (fp32)

    h2 = _layernorm(y, ln2_g_ref[...], ln2_b_ref[...], eps)
    ff = jnp.dot(h2.astype(jnp.bfloat16), w1_ref[...],
                 preferred_element_type=jnp.float32) + b1_ref[...]
    ff = ff * jax.nn.sigmoid(1.702 * ff)                       # quick_gelu, fp32
    ff = jnp.dot(ff.astype(jnp.bfloat16), w2_ref[...],
                 preferred_element_type=jnp.float32) + b2_ref[...]
    o_ref[0] = (y + ff).astype(o_ref.dtype)                    # residual 2


# --------------------------------------------------------------------------
# Per-layer wrapper
# --------------------------------------------------------------------------
def mlcd_encoder_layer(x, cos, sin, params, *, num_heads, eps, hw,
                       residual_dtype, approx_softmax):
    (ln1_g, ln1_b, wqkv, bqkv, wo, bo,
     ln2_g, ln2_b, wfc1, bfc1, wfc2, bfc2) = params
    B, S, D = x.shape
    assert D % num_heads == 0
    head_dim = D // num_heads
    scale = head_dim ** -0.5
    bf16 = jnp.bfloat16

    ts_a = _seq_tile(S, hw["ts_a"])                 # stage A sequence tile
    ts_b = _seq_tile(S, hw["ts_b"])                 # stage B query tile
    na, nb = S // ts_a, S // ts_b

    def blk(ts):
        return pl.BlockSpec((1, ts, D), lambda b, s: (b, s, 0))

    def blk_cs(ts):
        return pl.BlockSpec((ts, head_dim), lambda b, s: (s, 0))

    full_seq = pl.BlockSpec((1, S, D), lambda b, s: (b, 0, 0))

    cp_a = pltpu.CompilerParams(
        dimension_semantics=("parallel", "parallel"),
        vmem_limit_bytes=hw["vmem_limit_bytes"])
    cp_b = pltpu.CompilerParams(
        dimension_semantics=("parallel", hw["attn_seq_semantics"]),
        vmem_limit_bytes=hw["vmem_limit_bytes"])

    # ---- stage A: LN1 + fused QKV + RoPE ----
    q, k, v = pl.pallas_call(
        functools.partial(qkv_rope_kernel, num_heads=num_heads,
                          head_dim=head_dim, eps=eps, scale=scale),
        grid=(B, na),
        in_specs=[blk(ts_a), blk_cs(ts_a), blk_cs(ts_a),
                  _vmem_spec(), _vmem_spec(),        # ln1 gamma / beta
                  _vmem_spec(), _vmem_spec()],       # wqkv, bqkv
        out_specs=[blk(ts_a)] * 3,
        out_shape=[jax.ShapeDtypeStruct((B, S, D), bf16)] * 3,
        compiler_params=cp_a,
    )(x, cos, sin, ln1_g, ln1_b, wqkv, bqkv)

    # ---- stage B: attention + out_proj + residual + LN2 + MLP + residual ----
    # TODO(synk): single-buffer the full-S K/V inputs (pipeline_mode=
    # pl.Buffered(1)) once stable; their block index only changes with batch.
    # TODO(synk): for very long sequences add a KV grid axis with an
    # online-softmax accumulator (flash-style) instead of full-S K/V residency.
    # TODO(synk): for huge configs (D~1664, I~8192) tile the MLP intermediate
    # dimension instead of holding fc1/fc2 whole in VMEM (v7x 64 MiB).
    out = pl.pallas_call(
        functools.partial(attn_mlp_kernel, num_heads=num_heads,
                          head_dim=head_dim, eps=eps,
                          approx_softmax=approx_softmax),
        grid=(B, nb),
        in_specs=[blk(ts_b),                         # residual x block
                  blk(ts_b),                         # q block
                  full_seq,                          # k (full sequence)
                  full_seq,                          # v (full sequence)
                  _vmem_spec(), _vmem_spec(),        # wo, bo
                  _vmem_spec(), _vmem_spec(),        # ln2 gamma / beta
                  _vmem_spec(), _vmem_spec(),        # wfc1, bfc1
                  _vmem_spec(), _vmem_spec()],       # wfc2, bfc2
        out_specs=blk(ts_b),
        out_shape=jax.ShapeDtypeStruct((B, S, D), residual_dtype),
        compiler_params=cp_b,
    )(x, q, k, v, wo, bo, ln2_g, ln2_b, wfc1, bfc1, wfc2, bfc2)

    return out


def mlcd_encoder(inputs_embeds, rotary_pos_emb, prepared_layer_params, *,
                 num_heads, eps, residual_dtype=jnp.float32,
                 approx_softmax=True):
    """MLCDEncoder.forward (return_dict=False, output_hidden_states=False).

    inputs_embeds: (B, S, D); rotary_pos_emb: (S, head_dim // 2).
    prepared_layer_params: output of prepare_mlcd_params (bf16 weights, fused
    QKV), prepared ONCE at model load.
    Returns last_hidden_state (B, S, D) in residual_dtype.
    """
    # cos/sin repeated x2 along the last dim (matches torch repeat(1, 1, 2)).
    cos = jnp.tile(jnp.cos(rotary_pos_emb), (1, 2)).astype(jnp.float32)
    sin = jnp.tile(jnp.sin(rotary_pos_emb), (1, 2)).astype(jnp.float32)

    hw = _hw_defaults()
    hidden_states = inputs_embeds.astype(residual_dtype)
    # TODO(synk): overlap next-layer weight DMA with the current layer
    # (cross-pallas_call DMA futures) to hide the per-layer weight prologue.
    for params in prepared_layer_params:
        hidden_states = mlcd_encoder_layer(
            hidden_states, cos, sin, params, num_heads=num_heads, eps=eps,
            hw=hw, residual_dtype=residual_dtype, approx_softmax=approx_softmax)
    return hidden_states


# --------------------------------------------------------------------------
# Pure-JAX fp32 reference (for correctness check)
# --------------------------------------------------------------------------
def _ref_layer(x, cos, sin, p, num_heads, eps):
    (ln1_g, ln1_b, wq, bq, wk, bk, wv, bv, wo, bo,
     ln2_g, ln2_b, wfc1, bfc1, wfc2, bfc2) = p
    B, S, D = x.shape
    hd = D // num_heads

    def ln(v, g, b):
        mu = jnp.mean(v, -1, keepdims=True)
        var = jnp.mean((v - mu) ** 2, -1, keepdims=True)
        return (v - mu) / jnp.sqrt(var + eps) * g + b

    h = ln(x, ln1_g, ln1_b)
    q = (h @ wq + bq).reshape(B, S, num_heads, hd)
    k = (h @ wk + bk).reshape(B, S, num_heads, hd)
    v = (h @ wv + bv).reshape(B, S, num_heads, hd)

    def rope(t):
        t1, t2 = t[..., : hd // 2], t[..., hd // 2:]
        rot = jnp.concatenate([-t2, t1], axis=-1)
        return t * cos[None, :, None, :] + rot * sin[None, :, None, :]

    q, k = rope(q), rope(k)
    q = jnp.transpose(q, (0, 2, 1, 3))
    k = jnp.transpose(k, (0, 2, 1, 3))
    v = jnp.transpose(v, (0, 2, 1, 3))
    scores = jnp.einsum('bhqd,bhkd->bhqk', q, k) * (hd ** -0.5)
    attn = jax.nn.softmax(scores, axis=-1)
    out = jnp.einsum('bhqk,bhkd->bhqd', attn, v)
    out = jnp.transpose(out, (0, 2, 1, 3)).reshape(B, S, D)
    out = out @ wo + bo
    x = x + out
    h2 = ln(x, ln2_g, ln2_b)
    ff = h2 @ wfc1 + bfc1
    ff = ff * jax.nn.sigmoid(1.702 * ff)
    ff = ff @ wfc2 + bfc2
    return x + ff


def _ref_encoder(x, rotary, layer_params, num_heads, eps):
    cos = jnp.tile(jnp.cos(rotary), (1, 2))
    sin = jnp.tile(jnp.sin(rotary), (1, 2))
    for p in layer_params:
        x = _ref_layer(x, cos, sin, p, num_heads, eps)
    return x


# --------------------------------------------------------------------------
# main
# --------------------------------------------------------------------------
if __name__ == "__main__":
    # Small config consistent with MLCDVisionConfig fields.
    B, S = 2, 8
    hidden_size = 32
    num_heads = 4
    head_dim = hidden_size // num_heads
    intermediate_size = 64
    num_layers = 2
    eps = 1e-5

    key = jax.random.PRNGKey(0)
    key, k_x, k_r = jax.random.split(key, 3)

    inputs_embeds = jax.random.normal(k_x, (B, S, hidden_size), jnp.float32)
    rotary_pos_emb = jax.random.normal(k_r, (S, head_dim // 2), jnp.float32)

    def init_layer(k):
        ks = jax.random.split(k, 8)
        D, I = hidden_size, intermediate_size
        w = lambda kk, i, o: 0.02 * jax.random.normal(kk, (i, o), jnp.float32)
        b = lambda kk, o: 0.01 * jax.random.normal(kk, (1, o), jnp.float32)
        return [
            jnp.ones((1, D), jnp.float32),          # ln1 gamma
            jnp.zeros((1, D), jnp.float32),         # ln1 beta
            w(ks[0], D, D), b(ks[0], D),            # q_proj
            w(ks[1], D, D), b(ks[1], D),            # k_proj
            w(ks[2], D, D), b(ks[2], D),            # v_proj
            w(ks[3], D, D), b(ks[3], D),            # out_proj
            jnp.ones((1, D), jnp.float32),          # ln2 gamma
            jnp.zeros((1, D), jnp.float32),         # ln2 beta
            w(ks[4], D, I), b(ks[5], I),            # fc1
            w(ks[6], I, D), b(ks[7], D),            # fc2
        ]

    layer_keys = jax.random.split(key, num_layers)
    layer_params = [init_layer(k) for k in layer_keys]

    # One-time, load-time weight preparation (bf16 cast + fused QKV).
    prepared = prepare_mlcd_params(layer_params)

    out = mlcd_encoder(inputs_embeds, rotary_pos_emb, prepared,
                       num_heads=num_heads, eps=eps)
    out = jax.block_until_ready(out)

    ref = _ref_encoder(inputs_embeds, rotary_pos_emb, layer_params,
                       num_heads, eps)
    assert out.shape == (B, S, hidden_size)
    assert jnp.allclose(out, ref, atol=2e-2, rtol=2e-2), "mismatch vs reference"

    print("KERNEL_OK")
</pallas_src>

<mosaic_0001>
module attributes {stable_mosaic.version = 11 : i64} {
  func.func @qkv_rope_kernel(%arg0: i32, %arg1: i32, %arg2: memref<1x8x32xf32, #tpu.memory_space<vmem>>, %arg3: memref<8x8xf32, #tpu.memory_space<vmem>>, %arg4: memref<8x8xf32, #tpu.memory_space<vmem>>, %arg5: memref<1x32xf32, #tpu.memory_space<vmem>>, %arg6: memref<1x32xf32, #tpu.memory_space<vmem>>, %arg7: memref<32x96xbf16, #tpu.memory_space<vmem>>, %arg8: memref<1x96xf32, #tpu.memory_space<vmem>>, %arg9: memref<1x8x32xbf16, #tpu.memory_space<vmem>>, %arg10: memref<1x8x32xbf16, #tpu.memory_space<vmem>>, %arg11: memref<1x8x32xbf16, #tpu.memory_space<vmem>>) attributes {dimension_semantics = [#tpu.dimension_semantics<parallel>, #tpu.dimension_semantics<parallel>], iteration_bounds = array<i64: 2, 1>, scalar_prefetch = 0 : i64, scratch_operands = 0 : i64, tpu.core_type = #tpu.core_type<tc>, window_params = [{transform_indices = @transform_0, window_bounds = array<i64: 1, 8, 32>}, {transform_indices = @transform_1, window_bounds = array<i64: 8, 8>}, {transform_indices = @transform_2, window_bounds = array<i64: 8, 8>}, {pipeline_mode = #tpu.pipeline_mode<synchronous>, transform_indices = @transform_3, window_bounds = array<i64: 1, 32>}, {pipeline_mode = #tpu.pipeline_mode<synchronous>, transform_indices = @transform_4, window_bounds = array<i64: 1, 32>}, {pipeline_mode = #tpu.pipeline_mode<synchronous>, transform_indices = @transform_5, window_bounds = array<i64: 32, 96>}, {pipeline_mode = #tpu.pipeline_mode<synchronous>, transform_indices = @transform_6, window_bounds = array<i64: 1, 96>}, {transform_indices = @transform_7, window_bounds = array<i64: 1, 8, 32>}, {transform_indices = @transform_8, window_bounds = array<i64: 1, 8, 32>}, {transform_indices = @transform_9, window_bounds = array<i64: 1, 8, 32>}]} {
    %c0 = arith.constant 0 : index
    %c0_0 = arith.constant 0 : index
    %c0_1 = arith.constant 0 : index
    %0 = vector.load %arg2[%c0, %c0_0, %c0_1] : memref<1x8x32xf32, #tpu.memory_space<vmem>>, vector<1x8x32xf32>
    %1 = vector.shape_cast %0 : vector<1x8x32xf32> to vector<8x32xf32>
    %c0_2 = arith.constant 0 : index
    %c0_3 = arith.constant 0 : index
    %2 = vector.load %arg5[%c0_2, %c0_3] : memref<1x32xf32, #tpu.memory_space<vmem>>, vector<1x32xf32>
    %c0_4 = arith.constant 0 : index
    %c0_5 = arith.constant 0 : index
    %3 = vector.load %arg6[%c0_4, %c0_5] : memref<1x32xf32, #tpu.memory_space<vmem>>, vector<1x32xf32>
    %cst = arith.constant dense<0.000000e+00> : vector<8xf32>
    %4 = vector.multi_reduction <add>, %1, %cst [1] : vector<8x32xf32> to vector<8xf32>
    %5 = vector.shape_cast %4 : vector<8xf32> to vector<8x1xf32>
    %cst_6 = arith.constant 3.200000e+01 : f32
    %6 = vector.broadcast %cst_6 : f32 to vector<8x1xf32>
    %7 = arith.divf %5, %6 : vector<8x1xf32>
    %8 = vector.broadcast %7 : vector<8x1xf32> to vector<8x32xf32>
    %9 = arith.subf %1, %8 : vector<8x32xf32>
    %10 = arith.mulf %9, %9 : vector<8x32xf32>
    %cst_7 = arith.constant dense<0.000000e+00> : vector<8xf32>
    %11 = vector.multi_reduction <add>, %10, %cst_7 [1] : vector<8x32xf32> to vector<8xf32>
    %12 = vector.shape_cast %11 : vector<8xf32> to vector<8x1xf32>
    %cst_8 = arith.constant 3.200000e+01 : f32
    %13 = vector.broadcast %cst_8 : f32 to vector<8x1xf32>
    %14 = arith.divf %12, %13 : vector<8x1xf32>
    %15 = vector.broadcast %7 : vector<8x1xf32> to vector<8x32xf32>
    %16 = arith.subf %1, %15 : vector<8x32xf32>
    %cst_9 = arith.constant 9.99999974E-6 : f32
    %17 = vector.broadcast %cst_9 : f32 to vector<8x1xf32>
    %18 = arith.addf %14, %17 : vector<8x1xf32>
    %19 = math.rsqrt %18 : vector<8x1xf32>
    %20 = vector.broadcast %19 : vector<8x1xf32> to vector<8x32xf32>
    %21 = arith.mulf %16, %20 : vector<8x32xf32>
    %22 = vector.broadcast %2 : vector<1x32xf32> to vector<8x32xf32>
    %23 = arith.mulf %21, %22 : vector<8x32xf32>
    %24 = vector.broadcast %3 : vector<1x32xf32> to vector<8x32xf32>
    %25 = arith.addf %23, %24 : vector<8x32xf32>
    %26 = arith.truncf %25 : vector<8x32xf32> to vector<8x32xbf16>
    %c0_10 = arith.constant 0 : index
    %c0_11 = arith.constant 0 : index
    %27 = vector.load %arg7[%c0_10, %c0_11] : memref<32x96xbf16, #tpu.memory_space<vmem>>, vector<32x96xbf16>
    %cst_12 = arith.constant dense<0.000000e+00> : vector<8x96xf32>
    %28 = tpu.matmul %26, %27, %cst_12 {dimension_numbers = #tpu.dot_dimension_numbers<[1], [0], [0], [1], [0, 0, 1, 1], [], []>} : vector<8x32xbf16>, vector<32x96xbf16>, vector<8x96xf32> -> vector<8x96xf32>
    %c0_13 = arith.constant 0 : index
    %c0_14 = arith.constant 0 : index
    %29 = vector.load %arg8[%c0_13, %c0_14] : memref<1x96xf32, #tpu.memory_space<vmem>>, vector<1x96xf32>
    %30 = vector.broadcast %29 : vector<1x96xf32> to vector<8x96xf32>
    %31 = arith.addf %28, %30 : vector<8x96xf32>
    %32 = vector.extract_strided_slice %31 {offsets = [0, 0], sizes = [8, 32], strides = [1, 1]} : vector<8x96xf32> to vector<8x32xf32>
    %33 = vector.extract_strided_slice %31 {offsets = [0, 32], sizes = [8, 32], strides = [1, 1]} : vector<8x96xf32> to vector<8x32xf32>
    %34 = vector.extract_strided_slice %31 {offsets = [0, 64], sizes = [8, 32], strides = [1, 1]} : vector<8x96xf32> to vector<8x32xf32>
    %c0_15 = arith.constant 0 : index
    %c0_16 = arith.constant 0 : index
    %35 = vector.load %arg3[%c0_15, %c0_16] : memref<8x8xf32, #tpu.memory_space<vmem>>, vector<8x8xf32>
    %36 = vector.shape_cast %35 : vector<8x8xf32> to vector<8x1x8xf32>
    %c0_17 = arith.constant 0 : index
    %c0_18 = arith.constant 0 : index
    %37 = vector.load %arg4[%c0_17, %c0_18] : memref<8x8xf32, #tpu.memory_space<vmem>>, vector<8x8xf32>
    %38 = vector.shape_cast %37 : vector<8x8xf32> to vector<8x1x8xf32>
    %39 = vector.shape_cast %32 : vector<8x32xf32> to vector<8x4x8xf32>
    %40 = vector.extract_strided_slice %39 {offsets = [0, 0, 0], sizes = [8, 4, 4], strides = [1, 1, 1]} : vector<8x4x8xf32> to vector<8x4x4xf32>
    %41 = vector.extract_strided_slice %39 {offsets = [0, 0, 4], sizes = [8, 4, 4], strides = [1, 1, 1]} : vector<8x4x8xf32> to vector<8x4x4xf32>
    %cst_19 = arith.constant 0.000000e+00 : f32
    %42 = vector.broadcast %cst_19 : f32 to vector<8x4x4xf32>
    %43 = arith.subf %42, %41 : vector<8x4x4xf32>
    %44 = tpu.concatenate %43, %40 in 2 : vector<8x4x4xf32>, vector<8x4x4xf32> -> vector<8x4x8xf32>
    %45 = vector.broadcast %36 : vector<8x1x8xf32> to vector<8x4x8xf32>
    %46 = arith.mulf %39, %45 : vector<8x4x8xf32>
    %47 = vector.broadcast %38 : vector<8x1x8xf32> to vector<8x4x8xf32>
    %48 = arith.mulf %44, %47 : vector<8x4x8xf32>
    %49 = arith.addf %46, %48 : vector<8x4x8xf32>
    %50 = vector.shape_cast %49 : vector<8x4x8xf32> to vector<8x32xf32>
    %cst_20 = arith.constant 0.353553385 : f32
    %51 = vector.broadcast %cst_20 : f32 to vector<8x32xf32>
    %52 = arith.mulf %50, %51 : vector<8x32xf32>
    %53 = arith.truncf %52 : vector<8x32xf32> to vector<8x32xbf16>
    %c0_21 = arith.constant 0 : index
    %c0_22 = arith.constant 0 : index
    %c0_23 = arith.constant 0 : index
    %54 = vector.load %arg9[%c0_21, %c0_22, %c0_23] : memref<1x8x32xbf16, #tpu.memory_space<vmem>>, vector<1x8x32xbf16>
    %55 = vector.shape_cast %54 : vector<1x8x32xbf16> to vector<8x32xbf16>
    %56 = vector.shape_cast %53 : vector<8x32xbf16> to vector<1x8x32xbf16>
    tpu.vector_store %arg9[%c0_21, %c0_22, %c0_23], %56 {strides = array<i32>} : memref<1x8x32xbf16, #tpu.memory_space<vmem>>, vector<1x8x32xbf16>,
    %57 = vector.shape_cast %33 : vector<8x32xf32> to vector<8x4x8xf32>
    %58 = vector.extract_strided_slice %57 {offsets = [0, 0, 0], sizes = [8, 4, 4], strides = [1, 1, 1]} : vector<8x4x8xf32> to vector<8x4x4xf32>
    %59 = vector.extract_strided_slice %57 {offsets = [0, 0, 4], sizes = [8, 4, 4], strides = [1, 1, 1]} : vector<8x4x8xf32> to vector<8x4x4xf32>
    %cst_24 = arith.constant 0.000000e+00 : f32
    %60 = vector.broadcast %cst_24 : f32 to vector<8x4x4xf32>
    %61 = arith.subf %60, %59 : vector<8x4x4xf32>
    %62 = tpu.concatenate %61, %58 in 2 : vector<8x4x4xf32>, vector<8x4x4xf32> -> vector<8x4x8xf32>
    %63 = vector.broadcast %36 : vector<8x1x8xf32> to vector<8x4x8xf32>
    %64 = arith.mulf %57, %63 : vector<8x4x8xf32>
    %65 = vector.broadcast %38 : vector<8x1x8xf32> to vector<8x4x8xf32>
    %66 = arith.mulf %62, %65 : vector<8x4x8xf32>
    %67 = arith.addf %64, %66 : vector<8x4x8xf32>
    %68 = vector.shape_cast %67 : vector<8x4x8xf32> to vector<8x32xf32>
    %69 = arith.truncf %68 : vector<8x32xf32> to vector<8x32xbf16>
    %c0_25 = arith.constant 0 : index
    %c0_26 = arith.constant 0 : index
    %c0_27 = arith.constant 0 : index
    %70 = vector.load %arg10[%c0_25, %c0_26, %c0_27] : memref<1x8x32xbf16, #tpu.memory_space<vmem>>, vector<1x8x32xbf16>
    %71 = vector.shape_cast %70 : vector<1x8x32xbf16> to vector<8x32xbf16>
    %72 = vector.shape_cast %69 : vector<8x32xbf16> to vector<1x8x32xbf16>
    tpu.vector_store %arg10[%c0_25, %c0_26, %c0_27], %72 {strides = array<i32>} : memref<1x8x32xbf16, #tpu.memory_space<vmem>>, vector<1x8x32xbf16>,
    %73 = arith.truncf %34 : vector<8x32xf32> to vector<8x32xbf16>
    %c0_28 = arith.constant 0 : index
    %c0_29 = arith.constant 0 : index
    %c0_30 = arith.constant 0 : index
    %74 = vector.load %arg11[%c0_28, %c0_29, %c0_30] : memref<1x8x32xbf16, #tpu.memory_space<vmem>>, vector<1x8x32xbf16>
    %75 = vector.shape_cast %74 : vector<1x8x32xbf16> to vector<8x32xbf16>
    %76 = vector.shape_cast %73 : vector<8x32xbf16> to vector<1x8x32xbf16>
    tpu.vector_store %arg11[%c0_28, %c0_29, %c0_30], %76 {strides = array<i32>} : memref<1x8x32xbf16, #tpu.memory_space<vmem>>, vector<1x8x32xbf16>,
    return
  }
  func.func @transform_0(%arg0: i32, %arg1: i32) -> (i32, i32, i32) {
    %c0_i32 = arith.constant 0 : i32
    %c0_i32_0 = arith.constant 0 : i32
    return %arg0, %arg1, %c0_i32 : i32, i32, i32
  }
  func.func @transform_1(%arg0: i32, %arg1: i32) -> (i32, i32) {
    %c0_i32 = arith.constant 0 : i32
    %c0_i32_0 = arith.constant 0 : i32
    return %arg1, %c0_i32 : i32, i32
  }
  func.func @transform_2(%arg0: i32, %arg1: i32) -> (i32, i32) {
    %c0_i32 = arith.constant 0 : i32
    %c0_i32_0 = arith.constant 0 : i32
    return %arg1, %c0_i32 : i32, i32
  }
  func.func @transform_3(%arg0: i32, %arg1: i32) -> (i32, i32) {
    %c0_i32 = arith.constant 0 : i32
    %c0_i32_0 = arith.constant 0 : i32
    %c0_i32_1 = arith.constant 0 : i32
    return %c0_i32, %c0_i32_0 : i32, i32
  }
  func.func @transform_4(%arg0: i32, %arg1: i32) -> (i32, i32) {
    %c0_i32 = arith.constant 0 : i32
    %c0_i32_0 = arith.constant 0 : i32
    %c0_i32_1 = arith.constant 0 : i32
    return %c0_i32, %c0_i32_0 : i32, i32
  }
  func.func @transform_5(%arg0: i32, %arg1: i32) -> (i32, i32) {
    %c0_i32 = arith.constant 0 : i32
    %c0_i32_0 = arith.constant 0 : i32
    %c0_i32_1 = arith.constant 0 : i32
    return %c0_i32, %c0_i32_0 : i32, i32
  }
  func.func @transform_6(%arg0: i32, %arg1: i32) -> (i32, i32) {
    %c0_i32 = arith.constant 0 : i32
    %c0_i32_0 = arith.constant 0 : i32
    %c0_i32_1 = arith.constant 0 : i32
    return %c0_i32, %c0_i32_0 : i32, i32
  }
  func.func @transform_7(%arg0: i32, %arg1: i32) -> (i32, i32, i32) {
    %c0_i32 = arith.constant 0 : i32
    %c0_i32_0 = arith.constant 0 : i32
    return %arg0, %arg1, %c0_i32 : i32, i32, i32
  }
  func.func @transform_8(%arg0: i32, %arg1: i32) -> (i32, i32, i32) {
    %c0_i32 = arith.constant 0 : i32
    %c0_i32_0 = arith.constant 0 : i32
    return %arg0, %arg1, %c0_i32 : i32, i32, i32
  }
  func.func @transform_9(%arg0: i32, %arg1: i32) -> (i32, i32, i32) {
    %c0_i32 = arith.constant 0 : i32
    %c0_i32_0 = arith.constant 0 : i32
    return %arg0, %arg1, %c0_i32 : i32, i32, i32
  }
}

</mosaic_0001>

<bundles_post_ra>
// kernel: tpu_custom_call.1
= control target key start
LH: loop header
LB: loop body
LE: loop exit
PB: predicated region body
PF: predicated region fallthrough
CT: control target
= control target key end

     0   :  { %s2958_s0 = inlined_call_operand.hbm [shape: f32[2,8,32], index: 0, kind: input, shape index: {}]   ;;  %s2959_s1 = inlined_call_operand.hbm [shape: f32[8,8], index: 1, kind: input, shape index: {}]   ;;  %s2960_s2 = inlined_call_operand.hbm [shape: f32[8,8], index: 2, kind: input, shape index: {}]   ;;  %s2961_s3 = inlined_call_operand.hbm [shape: f32[1,32], index: 3, kind: input, shape index: {}]   ;;  %s2962_s4 = inlined_call_operand.hbm [shape: f32[1,32], index: 4, kind: input, shape index: {}]   ;;  %s2963_s5 = inlined_call_operand.hbm [shape: bf16[32,96], index: 5, kind: input, shape index: {}]   ;;  %s2964_s6 = inlined_call_operand.hbm [shape: f32[1,96], index: 6, kind: input, shape index: {}]   ;;  %s2965_s7 = inlined_call_operand.hbm [shape: bf16[2,8,32], index: 7, kind: output, shape index: {0}]   ;;  %s2966_s8 = inlined_call_operand.hbm [shape: bf16[2,8,32], index: 8, kind: output, shape index: {1}]   ;;  %s2967_s9 = inlined_call_operand.hbm [shape: bf16[2,8,32], index: 9, kind: output, shape index: {2}]  }
   0x1   :  { %2975 = sst [smem:[#allocation24_spill]] %s2958_s0 }
   0x2   :  { %2976 = sst [smem:[#allocation25_spill]] %s2959_s1 }
   0x3   :  { %2977 = sst [smem:[#allocation26_spill]] %s2960_s2 }
   0x4   :  { %2978 = sst [smem:[#allocation27_spill]] %s2961_s3 }
   0x5   :  { %2979 = sst [smem:[#allocation28_spill]] %s2965_s7 }
   0x6   :  { %2980 = sst [smem:[#allocation29_spill]] %s2966_s8 }
   0x7   :  { %2981 = sst [smem:[#allocation30_spill]] %s2967_s9 }
   0x8   :  { %15 = vsyncpa [#allocation3], 0 }
   0x9   :  { %17 = vsyncpa [#allocation3 + $0x1], 0 }
   0xa   :  { %18 = vsyncpa [#allocation6], 0 }
   0xb   :  { %19 = vsyncpa [#allocation9], 0 }
   0xc   :  { %20 = vsyncpa [#allocation12], 0 }
   0xd   :  { %21 = vsyncpa [#allocation4], 0 }
   0xe   :  { %23 = vsyncpa [#allocation4 + $0x1], 0 }
   0xf   :  { %24 = vsyncpa [#allocation16], 0 }
  0x10   :  { %26 = vsyncpa [#allocation16 + $0x1], 0  ;;  %s2204_s30 = smov 0   ;;  %s2206_s10 = smov 0  }
  0x11   :  { %s2208_s11 = smov 0   ;;  %s2210_s12 = smov 0  }
  0x12   :  { %s2212_s13 = smov 0   ;;  %s2214_s14 = smov 0  }
  0x13 LB: > { %s2235_s15 = sadd.s32 4294967295, %s2125_s14   ;;  %p1569_p0 = scmp.ge.s32.totalorder %s2125_s14, 1  ;;  %s2125_s14 = sphi %s2214_s14, %s32_s14   ;;  %s2121_s13 = sphi %s2212_s13, %s3014_s13   ;;  %s2117_s12 = sphi %s2210_s12, %s3013_s12   ;;  %s2113_s11 = sphi %s2208_s11, %s3012_s11   ;;  %s2109_s10 = sphi %s2206_s10, %s3011_s10   ;;  %s2105_s30 = sphi %s2204_s30, %s3010_s30  }
  0x14   : > { %p2968_p1 = scmp.eq.s32.totalorder %s2235_s15, 0  ;;  %p297_p2 = scmp.lt.s32.totalorder %s2125_s14, 3 }
  0x15   : > { %s2127_s17 = smov [#allocation5]   ;;  %s2128_s19 = smov [#allocation8]  }
  0x16   : > { %p2240_p3 = pnand %p1569_p0, %p297_p2  ;;  %s312_s18 = sshll.u32 %s2127_s17, 4  ;;  %s313_s18 = int_to_ptr.vmem [resolvable:$true] %s312_s18 }
  0x17   : > { %s336_s20 = sshll.u32 %s2128_s19, 4  ;;  %s2129_s22 = smov [#allocation11]   ;;  %s2253_s20 = int_to_ptr.vmem [resolvable:$true] %s336_s20 }
  0x18   : > { %s2982_s16 = scalar_select %p2240_p3, 1, 0 }
  0x19   : > { %p1649_p5 = pneg %p2240_p3  ;;  %s357_s23 = sshll.u32 %s2129_s22, 4  ;;  %s2255_s23 = int_to_ptr.vmem [resolvable:$true] %s357_s23 }
  0x1a   : > { %s2984_s1 = sld [smem:[#allocation25_spill]] }
  0x1b   : > { %p2249_p6 = pnand %p1649_p5, %p2968_p1 }
  0x1d   : > { %p2265_p8 = pneg %p2249_p6 }
  0x20   : > { %s1773_s26 = scalar_lea.hbm %s2984_s1, 128 }
  0x21   : > { %p1774_p7 = scmp.ne.s32.totalorder %s2984_s1, %s1773_s26  ;;  %p1780_p11 = scmp.lt.u32.totalorder %s1773_s26, %s2984_s1 }
  0x23   : > { %p1776_p9 = pnand %p2265_p8, %p1774_p7 }
  0x25   : > { %p1777_p10 = pneg %p1776_p9 }
  0x27   : > { %p1782_p12 = pnand %p1780_p11, %p1777_p10 }
  0x29   : > { %1785 = shalt.err (!%p1782_p12)
}
  0x2a   : > { %s1786_s22 = scalar_lea.vmem %s313_s18, 128  ;;  %p1794_p5 = scmp.lt.s32.totalorder %s313_s18, %s313_s18 }
  0x2b   : > { %p1787_p13 = scmp.ne.s32.totalorder %s313_s18, %s1786_s22  ;;  %p1795_p4 = scmp.lt.s32.totalorder %s1786_s22, %s1786_s22 }
  0x2d   : > { %p1789_p0 = pnand %p1787_p13, %p2265_p8  ;;  %p1796_p1 = por %p1795_p4, %p1794_p5 }
  0x2f   : > { %p1790_p2 = pneg %p1789_p0 }
  0x31   : > { %p1797_p3 = pnand %p1796_p1, %p1790_p2 }
  0x33   : > { %1800 = shalt.err (!%p1797_p3)
}
  0x34   : > { %1652 = dma.hbm_to_vmem [thread:$0]  (!%p2249_p6), %s2984_s1, 128, %s313_s18, [#allocation6]  }
  0x35   : > { %s2986_s3 = sld [smem:[#allocation27_spill]] }
  0x3b   : > { %s1801_s28 = scalar_lea.hbm %s2986_s3, 16 }
  0x3c   : > { %p1802_p7 = scmp.ne.s32.totalorder %s2986_s3, %s1801_s28  ;;  %p1808_p1 = scmp.lt.u32.totalorder %s1801_s28, %s2986_s3 }
  0x3e   : > { %p1804_p9 = pnand %p1802_p7, %p2265_p8 }
  0x40   : > { %p1805_p4 = pneg %p1804_p9 }
  0x42   : > { %p1810_p3 = pnand %p1808_p1, %p1805_p4 }
  0x44   : > { %1813 = shalt.err (!%p1810_p3)
}
  0x45   : > { %s1814_s18 = scalar_lea.vmem %s2253_s20, 16  ;;  %s1821_s24 = scalar_lea.vmem %s2253_s20, 32 }
  0x46   : > { %p1815_p10 = scmp.ne.s32.totalorder %s2253_s20, %s1814_s18  ;;  %p1822_p13 = scmp.lt.s32.totalorder %s2253_s20, %s2253_s20 }
  0x47   : > { %p1823_p0 = scmp.lt.s32.totalorder %s1821_s24, %s1814_s18 }
  0x48   : > { %p1817_p11 = pnand %p1815_p10, %p2265_p8 }
  0x49   : > { %p1824_p2 = por %p1823_p0, %p1822_p13 }
  0x4a   : > { %p1818_p12 = pneg %p1817_p11 }
  0x4c   : > { %p1825_p5 = pnand %p1824_p2, %p1818_p12 }
  0x4e   : > { %1828 = shalt.err (!%p1825_p5)
}
  0x4f   : > { %1658 = dma.hbm_to_vmem [thread:$0]  (!%p2249_p6), %s2986_s3, 16, %s2253_s20, [#allocation9]  }
  0x50   : > { %s1829_s28 = scalar_lea.hbm %s2963_s5, 256 }
  0x51   : > { %p1830_p7 = scmp.ne.s32.totalorder %s2963_s5, %s1829_s28  ;;  %p1836_p1 = scmp.lt.u32.totalorder %s1829_s28, %s2963_s5 }
  0x53   : > { %p1832_p9 = pnand %p1830_p7, %p2265_p8 }
  0x55   : > { %p1833_p4 = pneg %p1832_p9 }
  0x57   : > { %p1838_p3 = pnand %p1836_p1, %p1833_p4 }
  0x59   : > { %1841 = shalt.err (!%p1838_p3)
}
  0x5a   : > { %s1842_s20 = scalar_lea.vmem %s2255_s23, 256  ;;  %p1850_p13 = scmp.lt.s32.totalorder %s2255_s23, %s2255_s23 }
  0x5b   : > { %p1843_p10 = scmp.ne.s32.totalorder %s2255_s23, %s1842_s20  ;;  %p1851_p0 = scmp.lt.s32.totalorder %s1842_s20, %s1842_s20 }
  0x5d   : > { %p1845_p11 = pnand %p1843_p10, %p2265_p8  ;;  %p1852_p2 = por %p1851_p0, %p1850_p13 }
  0x5f   : > { %p1846_p12 = pneg %p1845_p11 }
  0x61   : > { %p1853_p5 = pnand %p1852_p2, %p1846_p12 }
  0x63   : > { %1856 = shalt.err (!%p1853_p5)
}
  0x64   : > { %s2130_s24 = smov 64   ;;  %s2131_s9 = smov 4  }
  0x65   : > { %1664 = dma.hbm_to_vmem [thread:$0]  (!%p2249_p6), %s2963_s5, 256, %s2255_s23, [#allocation12], %s2130_s24, %s2130_s24, %s2131_s9  }
  0x66   : > { %s2132_s27 = smov [#allocation7]   ;;  %s2133_s17 = smov [#allocation10]  }
  0x67   : > { %s325_s28 = sshll.u32 %s2132_s27, 4  ;;  %s347_s19 = sshll.u32 %s2133_s17, 4  ;;  %s326_s28 = int_to_ptr.vmem [resolvable:$true] %s325_s28  ;;  %s348_s19 = int_to_ptr.vmem [resolvable:$true] %s347_s19 }
  0x68   : > { %s2987_s2 = sld [smem:[#allocation26_spill]] }
  0x6e   : > { %s1857_s20 = scalar_lea.hbm %s2987_s2, 128 }
  0x6f   : > { %p1858_p7 = scmp.ne.s32.totalorder %s2987_s2, %s1857_s20  ;;  %p1864_p1 = scmp.lt.u32.totalorder %s1857_s20, %s2987_s2 }
  0x71   : > { %p1860_p9 = pnand %p1858_p7, %p2265_p8 }
  0x73   : > { %p1861_p4 = pneg %p1860_p9 }
  0x75   : > { %p1866_p3 = pnand %p1864_p1, %p1861_p4 }
  0x77   : > { %1869 = shalt.err (!%p1866_p3)
}
  0x78   : > { %s1870_s23 = scalar_lea.vmem %s326_s28, 128  ;;  %p1878_p13 = scmp.lt.s32.totalorder %s326_s28, %s326_s28 }
  0x79   : > { %p1871_p10 = scmp.ne.s32.totalorder %s326_s28, %s1870_s23  ;;  %p1879_p0 = scmp.lt.s32.totalorder %s1870_s23, %s1870_s23 }
  0x7b   : > { %p1873_p11 = pnand %p1871_p10, %p2265_p8  ;;  %p1880_p2 = por %p1879_p0, %p1878_p13 }
  0x7d   : > { %p1874_p12 = pneg %p1873_p11 }
  0x7f   : > { %p1881_p5 = pnand %p1880_p2, %p1874_p12 }
  0x81   : > { %1884 = shalt.err (!%p1881_p5)
}
  0x82   : > { %1655 = dma.hbm_to_vmem [thread:$0]  (!%p2249_p6), %s2987_s2, 128, %s326_s28, [#allocation6]  }
  0x83   : > { %s1885_s24 = scalar_lea.hbm %s2962_s4, 16 }
  0x84   : > { %p1886_p7 = scmp.ne.s32.totalorder %s2962_s4, %s1885_s24  ;;  %p1892_p1 = scmp.lt.u32.totalorder %s1885_s24, %s2962_s4 }
  0x86   : > { %p1888_p9 = pnand %p1886_p7, %p2265_p8 }
  0x88   : > { %p1889_p4 = pneg %p1888_p9 }
  0x8a   : > { %p1894_p3 = pnand %p1892_p1, %p1889_p4 }
  0x8c   : > { %1897 = shalt.err (!%p1894_p3)
}
  0x8d   : > { %s1898_s17 = scalar_lea.vmem %s348_s19, 16  ;;  %s1905_s28 = scalar_lea.vmem %s348_s19, 32 }
  0x8e   : > { %p1899_p10 = scmp.ne.s32.totalorder %s348_s19, %s1898_s17  ;;  %p1906_p13 = scmp.lt.s32.totalorder %s348_s19, %s348_s19 }
  0x8f   : > { %p1907_p0 = scmp.lt.s32.totalorder %s1905_s28, %s1898_s17 }
  0x90   : > { %p1901_p11 = pnand %p1899_p10, %p2265_p8 }
  0x91   : > { %p1908_p2 = por %p1907_p0, %p1906_p13 }
  0x92   : > { %p1902_p12 = pneg %p1901_p11 }
  0x94   : > { %p1909_p5 = pnand %p1908_p2, %p1902_p12 }
  0x96   : > { %1912 = shalt.err (!%p1909_p5)
}
  0x97   : > { %1661 = dma.hbm_to_vmem [thread:$0]  (!%p2249_p6), %s2962_s4, 16, %s348_s19, [#allocation9]  }
  0x98   : > { %s2134_s20 = smov [#allocation13]   ;;  %s1913_s7 = scalar_lea.hbm %s2964_s6, 16 }
  0x99   : > { %s371_s23 = sshll.u32 %s2134_s20, 4  ;;  %p1914_p7 = scmp.ne.s32.totalorder %s2964_s6, %s1913_s7  ;;  %s372_s23 = int_to_ptr.vmem [resolvable:$true] %s371_s23 }
  0x9a   : > { %p1920_p1 = scmp.lt.u32.totalorder %s1913_s7, %s2964_s6 }
  0x9b   : > { %p1916_p9 = pnand %p1914_p7, %p2265_p8 }
  0x9d   : > { %p1917_p4 = pneg %p1916_p9 }
  0x9f   : > { %p1922_p3 = pnand %p1920_p1, %p1917_p4 }
  0xa1   : > { %1925 = shalt.err (!%p1922_p3)
}
  0xa2   : > { %s1926_s19 = scalar_lea.vmem %s372_s23, 16  ;;  %s1933_s26 = scalar_lea.vmem %s372_s23, 32 }
  0xa3   : > { %p1927_p10 = scmp.ne.s32.totalorder %s372_s23, %s1926_s19  ;;  %p1934_p13 = scmp.lt.s32.totalorder %s372_s23, %s372_s23 }
  0xa4   : > { %p1935_p0 = scmp.lt.s32.totalorder %s1933_s26, %s1926_s19 }
  0xa5   : > { %p1929_p11 = pnand %p1927_p10, %p2265_p8 }
  0xa6   : > { %p1936_p2 = por %p1935_p0, %p1934_p13 }
  0xa7   : > { %p1930_p12 = pneg %p1929_p11 }
  0xa9   : > { %p1937_p5 = pnand %p1936_p2, %p1930_p12 }
  0xab   : > { %1940 = shalt.err (!%p1937_p5)
}
  0xac   : > { %1667 = dma.hbm_to_vmem [thread:$0]  (!%p2249_p6), %s2964_s6, 16, %s372_s23, [#allocation12]  }
  0xad   : > { %s2974_s29 = sadd.s32 4294967294, %s2125_s14   ;;  %s44_s28 = sadd.s32 1, %s2121_s13 }
  0xae   : > { %p46_p8 = scmp.ge.s32.totalorder %s44_s28, 2  ;;  %s53_s21 = sadd.s32 1, %s2113_s11 }
  0xaf   : > { %p60_p7 = scmp.ne.s32.totalorder %s2113_s11, %s2109_s10  ;;  %p61_p9 = scmp.eq.s32.totalorder %s2125_s14, 0 }
  0xb0   : > { %s3016_s28 = smov (%p46_p8, %s44_s28), 0  ;;  %p66_p1 = scmp.ne.s32.totalorder %s2109_s10, %s2105_s30 }
  0xb1   : > { %p2390_p4 = por %p61_p9, %p60_p7  ;;  %s48_s18 = ssub.s32 %s2121_s13, %s3016_s28 }
  0xb2   : > { %p228_p6 = scmp.eq.s32.totalorder %s2235_s15, 1  ;;  %p51_p3 = scmp.eq.s32.totalorder %s48_s18, 0 }
  0xb3   : > { %p2989_p10 = scmp.eq.s32.totalorder %s2235_s15, 0  ;;  %p234_p13 = scmp.eq.s32.totalorder %s2974_s29, 1 }
  0xb4   : > { %p2405_p12 = por %p228_p6, %p60_p7  ;;  %p1688_p2 = scmp.lt.s32.totalorder %s2125_s14, 2 }
  0xb5   : > { %p2401_p11 = por %p2989_p10, %p66_p1  ;;  %p2414_p0 = por %p234_p13, %p66_p1 }
  0xb6   : > { %s2991_s23 = scalar_select %p2405_p12, 1, 0 }
  0xb7   : > { %s2412_s1 = scalar_select %p51_p3, %s2113_s11, %s53_s21  }
  0xb8   : > { %s2992_s3 = scalar_select %p2414_p0, 1, 0 }
  0xb9   : > { %s382_s7 = sand.u32 1, %s2113_s11   ;;  %s1578_s8 = sshll.u32 %s2121_s13, 7 }
  0xba   : > { %s1577_s24 = sshll.u32 %s382_s7, 3  ;;  %s2993_s0 = sld [smem:[#allocation24_spill]] }
  0xbb   : > { %s386_s26 = scalar_lea.vmem [#allocation2], %s1577_s24  ;;  %p2428_p5 = pnand %p1688_p2, %p2390_p4 }
  0xbc   : > { %s394_s27 = sshll.u32 %s386_s26, 4  ;;  %s383_s21 = scalar_lea.sflag [#allocation3], %s382_s7  ;;  %s2432_s27 = int_to_ptr.vmem [resolvable:$true] %s394_s27 }
  0xbd   : > { %p1943_p7 = pneg %p2428_p5 }
  0xc0   : > { %s2424_s19 = scalar_lea.hbm %s2993_s0, %s1578_s8  ;;  %s1946_s22 = scalar_lea.hbm %s2993_s0, 256 }
  0xc1   : > { %s1941_s18 = scalar_lea.hbm %s2424_s19, 128  ;;  %p1947_p4 = scmp.lt.u32.totalorder %s2424_s19, %s2993_s0 }
  0xc2   : > { %p1942_p8 = scmp.ne.s32.totalorder %s2424_s19, %s1941_s18  ;;  %p1948_p6 = scmp.lt.u32.totalorder %s1946_s22, %s1941_s18 }
  0xc3   : > { %p1950_p10 = scmp.lt.u32.totalorder %s1941_s18, %s2424_s19 }
  0xc4   : > { %p1944_p9 = pnand %p1943_p7, %p1942_p8  ;;  %p1949_p3 = por %p1948_p6, %p1947_p4 }
  0xc6   : > { %p1945_p1 = pneg %p1944_p9  ;;  %p1951_p13 = por %p1950_p10, %p1949_p3 }
  0xc8   : > { %p1952_p2 = pnand %p1951_p13, %p1945_p1 }
  0xca   : > { %1955 = shalt.err (!%p1952_p2)
}
  0xcb   : > { %s1956_s7 = scalar_lea.vmem %s2432_s27, 128  ;;  %s2135_s26 = smov [#allocation2]  }
  0xcc   : > { %p1957_p8 = scmp.ne.s32.totalorder %s2432_s27, %s1956_s7  ;;  %s1961_s8 = sshll.u32 %s2135_s26, 4  ;;  %s1962_s8 = int_to_ptr.vmem [resolvable:$false] %s1961_s8 }
  0xcd   : > { %s1963_s24 = scalar_lea.vmem %s1962_s8, 256  ;;  %p1964_p12 = scmp.lt.s32.totalorder %s2432_s27, %s1962_s8 }
  0xce   : > { %p1959_p9 = pnand %p1957_p8, %p1943_p7  ;;  %p1965_p4 = scmp.lt.s32.totalorder %s1963_s24, %s1956_s7 }
  0xd0   : > { %p1960_p0 = pneg %p1959_p9  ;;  %p1966_p6 = por %p1965_p4, %p1964_p12 }
  0xd2   : > { %p1967_p3 = pnand %p1966_p6, %p1960_p0 }
  0xd4   : > { %1970 = shalt.err (!%p1967_p3)
}
  0xd5   : > { %1671 = dma.hbm_to_vmem [thread:$0]  (!%p2428_p5), %s2424_s19, 128, %s2432_s27, %s383_s21  }
  0xd6   : > { %p2995_p1 = scmp.ne.s32.totalorder %s2982_s16, 0 }
  0xd7   : > { %s2462_s18 = sand.u32 (!%p2995_p1), 1, %s2109_s10  }
  0xd8   : > { %403 = sbr.rel (%p2995_p1) target bundleno = 1329 (0x531), region = 48  ;;  %s1580_s22 = sshll.u32 (!%p2995_p1), %s2462_s18, 3 }
  0xd9   : > { %s406_s9 = scalar_lea.sflag (!%p2995_p1), [#allocation3], %s2462_s18  ;;  %s409_s25 = scalar_lea.vmem (!%p2995_p1), [#allocation2], %s1580_s22 }
  0xdf   : > { %2080 = dma.done.wait (%p2401_p11), %s406_s9, 128  }
  0xe0   : > { %2082 = vsyncadd (%p2401_p11), %s406_s9, 4294967168  ;;  %p2996_p12 = scmp.eq.s32.totalorder %s2235_s15, 0 }
  0xe2   : > { %2084 = dma.done.wait (%p2996_p12), [#allocation6], 256   ;;  %p2997_p0 = pmov %p2996_p12 }
  0xe4   : > { %2086 = vsyncadd (%p2997_p0), [#allocation6], 4294967040  ;;  %p2998_p5 = pmov %p2997_p0 }
  0xe5   : > { %p2999_p7 = pmov %p2997_p0 }
  0xe6   : > { %2088 = dma.done.wait (%p2998_p5), [#allocation9], 32  }
  0xe7   : > { %2090 = vsyncadd (%p2999_p7), [#allocation9], 4294967264  ;;  %p3000_p10 = pmov %p2997_p0 }
  0xe8   : > { %p3001_p13 = pmov %p2997_p0 }
  0xe9   : > { %2092 = dma.done.wait (%p3000_p10), [#allocation12], 272  }
  0xea   : > { %2094 = vsyncadd (%p3001_p13), [#allocation12], 4294967024  ;;  %vm482_vm0 = vcmask 261120   ;;  %v479_v0 = vld [vmem:[%s409_s25] sm:$0xff]  ;;  %v2136_v8 = vmov 0.0   ;;  %vm2137_vm1 = vmmov 0   ;;  %v584_v26 = vlaneseq }
  0xeb   : > { %v483_v1 = vsel %vm482_vm0, %v479_v0, 0.0  ;;  %v1767_v7 = vld [vmem:[#allocation11] sm:$0xff]   ;;  %1609 = vmatprep.subr.bf16.mxu0 %v2136_v8  ;;  %1613 = vmatprep.mubr.msk.bf16.mxu0 %vm2137_vm1, %v2136_v8  ;;  %v1768_v9 = vld [vmem:[#allocation11 + $0x8] sm:$0xff]   ;;  %v1590_v14 = vld [vmem:[#allocation8] ss:$0 sm:$0xff]  ;;  %s2138_s16 = smov 104  }
  0xec   : > { %484 = vadd.xlane.f32.xlu0 %v483_v1  ;;  %1610 = vmatpush3.bf16.msra.mxu0 %v1767_v7  ;;  %v1591_v16 = vld [vmem:[#allocation10] ss:$0 sm:$0xff]  ;;  %v1592_v20 = vld [vmem:[#allocation13] ss:$0 sm:$0xff]  ;;  %s2139_s20 = smov 120   ;;  %s2140_s19 = smov 112  }
  0xed   : > { %1611 = vmatprep.subr.bf16.mxu0 %v2136_v8  ;;  %s2141_s27 = smov 96   ;;  %v2142_v27 = vmov 1983009808   ;;  %v2494_v29 = vshrl.u32 %v584_v26, 7  ;;  %v2143_v31 = vmov 1934713408  }
  0xee   : > { %v693_v28 = vunpack.c.l.s4 %v2142_v27  ;;  %v725_v32 = vunpack.c.l.s4 %v2143_v31  ;;  %s2144_s17 = smov 4   ;;  %s2145_s21 = smov 124   ;;  %vm830_vm2 = vcmask 31744   ;;  %vm1023_vm3 = vcmask 64512  }
  0xef   : > { %s2147_s7 = smov 16   ;;  %s2148_s26 = smov 8   ;;  %vm1025_vm4 = vcmask 130048   ;;  %vm1027_vm5 = vcmask 195584   ;;  %vm1031_vm6 = vcmask 257024  }
  0xf0   : > { %1612 = vmatpush3.bf16.msra.mxu0 %v1768_v9  ;;  %v694_v30 = vunpack.c.0.s8 %v693_v28  ;;  %v726_v37 = vunpack.c.0.s8 %v725_v32  ;;  %s2149_s8 = smov 24   ;;  %s2821_s24 = sshll.u32 %s2462_s18, 2 }
  0xf1   : > { %s2827_s22 = sshll.u32 %s2117_s12, 6  ;;  %s463_s9 = scalar_lea.vmem [#allocation14], %s2821_s24 }
  0xf2   : > { %v2497_v35 = vsub.s32 %v694_v30, %v2494_v29  ;;  %v2504_v43 = vsub.s32 %v726_v37, %v2494_v29  ;;  %s1335_s25 = sshll.u32 %s463_s9, 4  ;;  %s2150_s12 = smov 64   ;;  %s2838_s25 = int_to_ptr.vmem [resolvable:$true] %s1335_s25 }
  0xf3   : > { %p3003_p2 = scmp.ne.s32.totalorder %s2991_s23, 0 }
 0x179   : > { %v485_v2 = vpop.xlane.xlu0 %484 }
 0x17a   : > { %v487_v3 = vmul.f32 0.03125, %v485_v2 }
 0x17c   : > { %v488_v4 = vsub.f32 %v479_v0, %v487_v3 }
 0x17e   : > { %v489_v5 = vmul.f32 %v488_v4, %v488_v4 }
 0x180   : > { %v490_v6 = vsel %vm482_vm0, %v489_v5, 0.0  ;;  %v2146_v5 = vmov 1966171168  }
 0x181   : > { %491 = vadd.xlane.f32.xlu0 %v490_v6  ;;  %v582_v6 = vunpack.c.l.s4 %v2146_v5 }
 0x183   : > { %v583_v9 = vunpack.c.0.s8 %v582_v6 }
 0x20e   : > { %v492_v10 = vpop.xlane.xlu0 %491 }
 0x20f   : > { %v493_v11 = vmul.f32 0.03125, %v492_v10 }
 0x211   : > { %v494_v12 = vadd.f32 1e-05, %v493_v11 }
 0x213   : > { %1771 = vrsqrt.f32 %v494_v12 }
 0x21d   : > { %v1772_v13 = vpop.eup %1771 }
 0x21e   : > { %v496_v15 = vmul.f32 %v1772_v13, %v488_v4 }
 0x220   : > { %v503_v17 = vmul.f32 %v1590_v14, %v496_v15  ;;  %v2569_v14 = vsub.s32 %v583_v9, %v2494_v29 }
 0x222   : > { %v510_v18 = vadd.f32 %v1591_v16, %v503_v17 }
 0x224   : > { %v511_v19 = vpack.c.bf16 %v510_v18, %v510_v18 }
 0x226   : > { %1614 = vmatmul.mubr.msk.bf16.vlgmr.msra.gmra.mrb[0].mxu0 %vm482_vm0, %v511_v19 }
 0x2f9   : > { %v572_v21 = vpop.f32.mrb[0].mxu0 }
 0x2fa   : > { %v2488_v22 = vadd.f32 %v1592_v20, %v572_v21  ;;  %v1615_v23 = vpop.f32.mrb[1].mxu0 }
 0x2fb   : > { %v575_v24 = vpop.f32.mrb[2].mxu0  ;;  %v578_v23 = vld [vmem:[#allocation5] sm:$0xff] }
 0x2fc   : > { %687 = vrot.lane.b32.xlu0 %v2488_v22, %s2138_s16  ;;  %681 = vrot.lane.b32.xlu1 %v2488_v22, %s2139_s20  ;;  %v1616_v25 = vpop.f32.mrb[3].mxu0  ;;  %v629_v24 = vld [vmem:[#allocation7] sm:$0xff]  ;;  %v580_v32 = vcombine.high %v578_v23, %v578_v23 }
 0x2fd   : > { %v587_v25 = vrot.slane %v578_v23, %v2569_v14  ;;  %v638_v30 = vrot.slane %v629_v24, %v2569_v14 }
 0x2ff   : > { %v603_v37 = vrot.slane %v587_v25, %v2569_v14 }
 0x300   : > { %684 = vrot.lane.b32.xlu1 %v2488_v22, %s2140_s19  ;;  %s3002_s19 = sld [smem:[#allocation28_spill]] }
 0x304   : > { %1033 = vrot.lane.b32.xlu1 %v2488_v22, %s2141_s27 }
 0x36e   : > { %v688_v33 = vpop.permute.xlu0 %687  ;;  %v682_v34 = vpop.permute.xlu1 %681 }
 0x36f   : > { %1035 = vrot.lane.b32.xlu1 %v682_v34, %s2141_s27  ;;  %v706_v36 = vcombine.low %v682_v34, %v688_v33  ;;  %v707_v44 = vcombine.high %v682_v34, %v688_v33 }
 0x371   : > { %v714_v40 = vrot.slane %v706_v36, %v2497_v35  ;;  %v721_v49 = vrot.slane %v707_v44, %v2497_v35  ;;  %v2603_v44 = vsub.s32 0, %v2494_v29  ;;  %v595_v29 = vcombine.high %v587_v25, %v587_v25 }
 0x372   : > { %v685_v38 = vpop.permute.xlu1 %684 }
 0x373   : > { %v690_v39 = vcombine.low %v2488_v22, %v685_v38  ;;  %1037 = vrot.lane.b32.xlu1 %v685_v38, %s2141_s27  ;;  %v691_v41 = vcombine.high %v2488_v22, %v685_v38  ;;  %v617_v6 = vrot.slane %v595_v29, %v2569_v14 }
 0x375   : > { %v698_v42 = vrot.slane %v690_v39, %v2497_v35  ;;  %v705_v46 = vrot.slane %v691_v41, %v2497_v35  ;;  %v654_v39 = vrot.slane %v638_v30, %v2569_v14  ;;  %v594_v41 = vrot.slane %v580_v32, %v2569_v14 }
 0x376   : > { %v1034_v3 = vpop.permute.xlu1 %1033  ;;  %v627_v25 = vcombine.high %v617_v6, %v617_v6 }
 0x377   : > { %v722_v45 = vcombine.low %v698_v42, %v714_v40  ;;  %1039 = vrot.lane.b32.xlu1 %v688_v33, %s2141_s27  ;;  %v723_v47 = vcombine.high %v698_v42, %v714_v40  ;;  %v738_v51 = vcombine.low %v705_v46, %v721_v49  ;;  %v739_v54 = vcombine.high %v705_v46, %v721_v49  ;;  %s2836_s27 = scalar_lea.hbm %s3002_s19, %s2827_s22 }
 0x378   : > { %v631_v42 = vcombine.high %v629_v24, %v629_v24  ;;  %v625_v49 = vcombine.high %v603_v37, %v603_v37 }
 0x379   : > { %v2508_v48 = vrot.slane %v722_v45, %v2504_v43  ;;  %v2516_v52 = vrot.slane %v723_v47, %v2504_v43  ;;  %v2527_v55 = vrot.slane %v738_v51, %v2504_v43  ;;  %v2538_v57 = vrot.slane %v739_v54, %v2504_v43 }
 0x37a   : > { %v2619_v51 = vrot.slane %v654_v39, %v2603_v44 }
 0x37b   : > { %806 = vrot.lane.b32.xlu0 %v2508_v48, %s2144_s17  ;;  %v758_v50 = vsub.f32 0.0, %v2508_v48  ;;  %v2522_v53 = vcombine.high %v2508_v48, %v2136_v8  ;;  %v2533_v56 = vcombine.high %v2516_v52, %v2136_v8  ;;  %v2544_v58 = vcombine.high %v2527_v55, %v2136_v8 }
 0x37c   : > { %v760_v59 = vsub.f32 0.0, %v2516_v52  ;;  %v2552_v60 = vcombine.high %v2538_v57, %v2136_v8  ;;  %v762_v61 = vsub.f32 0.0, %v2527_v55  ;;  %v764_v63 = vsub.f32 0.0, %v2538_v57 }
 0x37d   : > { %774 = vrot.lane.b32.xlu1 %v758_v50, %s2145_s21  ;;  %v759_v62 = vsub.f32 0.0, %v2522_v53  ;;  %v761_v0 = vsub.f32 0.0, %v2533_v56  ;;  %v763_v1 = vsub.f32 0.0, %v2544_v58  ;;  %v676_v50 = vcombine.high %v654_v39, %v654_v39 }
 0x37e   : > { %v765_v2 = vsub.f32 0.0, %v2552_v60 }
 0x37f   : > { %810 = vrot.lane.b32.xlu0 %v2516_v52, %s2144_s17 }
 0x381   : > { %808 = vrot.lane.b32.xlu1 %v2522_v53, %s2144_s17 }
 0x383   : > { %814 = vrot.lane.b32.xlu0 %v2527_v55, %s2144_s17 }
 0x385   : > { %812 = vrot.lane.b32.xlu1 %v2533_v56, %s2144_s17 }
 0x387   : > { %818 = vrot.lane.b32.xlu0 %v2538_v57, %s2144_s17 }
 0x389   : > { %816 = vrot.lane.b32.xlu1 %v2544_v58, %s2144_s17 }
 0x38b   : > { %778 = vrot.lane.b32.xlu0 %v760_v59, %s2145_s21  ;;  %v610_v59 = vrot.slane %v594_v41, %v2569_v14 }
 0x38d   : > { %820 = vrot.lane.b32.xlu1 %v2552_v60, %s2144_s17 }
 0x38f   : > { %782 = vrot.lane.b32.xlu0 %v762_v61, %s2145_s21  ;;  %v2623_v61 = vrot.slane %v631_v42, %v2569_v14 }
 0x391   : > { %776 = vrot.lane.b32.xlu1 %v759_v62, %s2145_s21  ;;  %v2626_v62 = vrot.slane %v603_v37, %v2603_v44 }
 0x393   : > { %786 = vrot.lane.b32.xlu0 %v764_v63, %s2145_s21 }
 0x395   : > { %780 = vrot.lane.b32.xlu1 %v761_v0, %s2145_s21 }
 0x399   : > { %784 = vrot.lane.b32.xlu1 %v763_v1, %s2145_s21 }
 0x39d   : > { %788 = vrot.lane.b32.xlu1 %v765_v2, %s2145_s21  ;;  %v2638_v2 = vrot.slane %v625_v49, %v2603_v44 }
 0x3e1   : > { %v1036_v4 = vpop.permute.xlu1 %1035 }
 0x3e5   : > { %v1038_v7 = vpop.permute.xlu1 %1037 }
 0x3e6   : > { %v1045_v10 = vcombine.low %v1034_v3, %v1038_v7  ;;  %v1046_v15 = vcombine.high %v1034_v3, %v1038_v7  ;;  %v2641_v3 = vrot.slane %v676_v50, %v2603_v44  ;;  %v596_v7 = vcombine.high %v594_v41, %v594_v41 }
 0x3e8   : > { %v1053_v16 = vrot.slane %v1045_v10, %v2497_v35  ;;  %v2578_v27 = vrot.slane %v1046_v15, %v2497_v35  ;;  %v879_v15 = vmul.f32 %v2626_v62, %v2508_v48  ;;  %v2665_v48 = vrot.slane %v610_v59, %v2603_v44 }
 0x3e9   : > { %v1040_v11 = vpop.permute.xlu1 %1039 }
 0x3ea   : > { %v1061_v12 = vcombine.low %v1036_v4, %v1040_v11  ;;  %v1062_v13 = vcombine.high %v1036_v4, %v1040_v11  ;;  %v646_v4 = vcombine.high %v638_v30, %v638_v30  ;;  %v661_v11 = vrot.slane %v2623_v61, %v2569_v14 }
 0x3ec   : > { %v1069_v17 = vrot.slane %v1061_v12, %v2497_v35  ;;  %v2574_v19 = vrot.slane %v1062_v13, %v2497_v35  ;;  %v626_v12 = vcombine.high %v610_v59, %v610_v59  ;;  %v668_v23 = vrot.slane %v646_v4, %v2569_v14 }
 0x3ed   : > { %v807_v18 = vpop.permute.xlu0 %806  ;;  %v677_v24 = vcombine.high %v661_v11, %v661_v11  ;;  %v647_v59 = vcombine.high %v2623_v61, %v2623_v61 }
 0x3ee   : > { %v1077_v20 = vcombine.low %v1053_v16, %v1069_v17  ;;  %v1078_v21 = vcombine.high %v1053_v16, %v1069_v17  ;;  %v1093_v33 = vcombine.low %v2578_v27, %v2574_v19  ;;  %v1094_v13 = vcombine.high %v2578_v27, %v2574_v19 }
 0x3ef   : > { %v775_v26 = vpop.permute.xlu1 %774  ;;  %v678_v32 = vcombine.high %v668_v23, %v668_v23  ;;  %v2679_v41 = vrot.slane %v626_v12, %v2603_v44  ;;  %v2682_v49 = vrot.slane %v668_v23, %v2603_v44  ;;  %v2685_v29 = vrot.slane %v677_v24, %v2603_v44 }
 0x3f0   : > { %v2581_v28 = vrot.slane %v1077_v20, %v2504_v43  ;;  %v2593_v36 = vrot.slane %v1078_v21, %v2504_v43  ;;  %v2612_v46 = vrot.slane %v1093_v33, %v2504_v43  ;;  %v831_v63 = vsel %vm830_vm2, %v775_v26, %v807_v18 }
 0x3f1   : > { %v811_v31 = vpop.permute.xlu0 %810  ;;  %v927_v9 = vmul.f32 %v2619_v51, %v831_v63  ;;  %v881_v18 = vmul.f32 %v2638_v2, %v2516_v52  ;;  %v624_v26 = vrot.slane %v596_v7, %v2569_v14  ;;  %v2670_v52 = vrot.slane %v661_v11, %v2603_v44 }
 0x3f2   : > { %1161 = vrot.lane.b32.xlu0 %v2581_v28, %s2144_s17  ;;  %v2590_v34 = vcombine.high %v2581_v28, %v2136_v8  ;;  %v2609_v45 = vcombine.high %v2593_v36, %v2136_v8  ;;  %v2633_v0 = vcombine.high %v2612_v46, %v2136_v8  ;;  %v1113_v5 = vsub.f32 0.0, %v2581_v28 }
 0x3f3   : > { %v2596_v38 = vpop.permute.xlu1 %808  ;;  %v1115_v19 = vsub.f32 0.0, %v2593_v36  ;;  %v935_v27 = vadd.f32 %v927_v9, %v879_v15  ;;  %v2673_v33 = vrot.slane %v1094_v13, %v2504_v43  ;;  %v1117_v4 = vsub.f32 0.0, %v2612_v46 }
 0x3f4   : > { %1163 = vrot.lane.b32.xlu1 %v2590_v34, %s2144_s17  ;;  %v1114_v17 = vsub.f32 0.0, %v2590_v34  ;;  %v1116_v39 = vsub.f32 0.0, %v2609_v45  ;;  %v628_v61 = vcombine.high %v624_v26, %v624_v26  ;;  %v885_v15 = vmul.f32 %v2679_v41, %v2538_v57 }
 0x3f5   : > { %v815_v40 = vpop.permute.xlu0 %814  ;;  %v2710_v12 = vcombine.high %v2673_v33, %v2136_v8 }
 0x3f6   : > { %1165 = vrot.lane.b32.xlu0 %v2593_v36, %s2144_s17 }
 0x3f7   : > { %v2614_v47 = vpop.permute.xlu1 %812 }
 0x3f8   : > { %1167 = vrot.lane.b32.xlu1 %v2609_v45, %s2144_s17 }
 0x3f9   : > { %v819_v54 = vpop.permute.xlu0 %818 }
 0x3fa   : > { %1169 = vrot.lane.b32.xlu0 %v2612_v46, %s2144_s17 }
 0x3fb   : > { %v2635_v1 = vpop.permute.xlu1 %816 }
 0x3fc   : > { %1171 = vrot.lane.b32.xlu1 %v2633_v0, %s2144_s17 }
 0x3fd   : > { %v779_v10 = vpop.permute.xlu0 %778 }
 0x3fe   : > { %v833_v16 = vsel %vm830_vm2, %v779_v10, %v811_v31  ;;  %1129 = vrot.lane.b32.xlu0 %v1113_v5, %s2145_s21  ;;  %v2697_v5 = vrot.slane %v627_v25, %v2603_v44  ;;  %v2701_v10 = vrot.slane %v678_v32, %v2603_v44 }
 0x3ff   : > { %v929_v20 = vmul.f32 %v2641_v3, %v833_v16  ;;  %v2660_v21 = vpop.permute.xlu1 %820 }
 0x400   : > { %1131 = vrot.lane.b32.xlu1 %v1114_v17, %s2145_s21 }
 0x401   : > { %v937_v30 = vadd.f32 %v929_v20, %v881_v18  ;;  %v783_v31 = vpop.permute.xlu0 %782  ;;  %v882_v18 = vmul.f32 %v2697_v5, %v2533_v56  ;;  %v1119_v20 = vsub.f32 0.0, %v2673_v33 }
 0x402   : > { %v835_v37 = vsel %vm830_vm2, %v783_v31, %v815_v40  ;;  %1133 = vrot.lane.b32.xlu0 %v1115_v19, %s2145_s21  ;;  %v2690_v40 = vrot.slane %v617_v6, %v2603_v44  ;;  %v883_v6 = vmul.f32 %v2665_v48, %v2527_v55  ;;  %v675_v55 = vrot.slane %v647_v59, %v2569_v14 }
 0x403   : > { %v943_v42 = vcombine.low %v935_v27, %v937_v30  ;;  %v777_v50 = vpop.permute.xlu1 %776  ;;  %v931_v7 = vmul.f32 %v2670_v52, %v835_v37  ;;  %v1120_v14 = vsub.f32 0.0, %v2710_v12  ;;  %v2732_v30 = vrot.slane %v624_v26, %v2603_v44 }
 0x404   : > { %v832_v63 = vsel %vm830_vm2, %v777_v50, %v2596_v38  ;;  %1135 = vrot.lane.b32.xlu1 %v1116_v39, %s2145_s21  ;;  %v1118_v38 = vsub.f32 0.0, %v2633_v0  ;;  %v679_v19 = vcombine.high %v675_v55, %v675_v55  ;;  %v2729_v56 = vrot.slane %v675_v55, %v2603_v44 }
 0x405   : > { %v787_v9 = vpop.permute.xlu0 %786  ;;  %v928_v13 = vmul.f32 %v2682_v49, %v832_v63  ;;  %v939_v23 = vadd.f32 %v931_v7, %v883_v6  ;;  %v2738_v37 = vrot.slane %v628_v61, %v2603_v44  ;;  %v950_v50 = vrot.slane %v943_v42, %v2497_v35 }
 0x406   : > { %v837_v11 = vsel %vm830_vm2, %v787_v9, %v819_v54  ;;  %1137 = vrot.lane.b32.xlu0 %v1117_v4, %s2145_s21  ;;  %v880_v54 = vmul.f32 %v2690_v40, %v2522_v53  ;;  %v2741_v39 = vrot.slane %v679_v19, %v2603_v44 }
 0x407   : > { %v933_v16 = vmul.f32 %v2685_v29, %v837_v11  ;;  %v781_v17 = vpop.permute.xlu1 %780  ;;  %v886_v44 = vmul.f32 %v2738_v37, %v2552_v60 }
 0x408   : > { %v834_v8 = vsel %vm830_vm2, %v781_v17, %v2614_v47  ;;  %1139 = vrot.lane.b32.xlu1 %v1118_v38, %s2145_s21  ;;  %v936_v53 = vadd.f32 %v928_v13, %v880_v54 }
 0x409   : > { %v941_v57 = vadd.f32 %v933_v16, %v885_v15  ;;  %v930_v24 = vmul.f32 %v2701_v10, %v834_v8 }
 0x40a   : > { %1141 = vrot.lane.b32.xlu0 %v1119_v20, %s2145_s21 }
 0x40b   : > { %v959_v25 = vcombine.low %v939_v23, %v941_v57  ;;  %v938_v27 = vadd.f32 %v930_v24, %v882_v18  ;;  %v785_v47 = vpop.permute.xlu1 %784 }
 0x40c   : > { %v836_v31 = vsel %vm830_vm2, %v785_v47, %v2635_v1  ;;  %1143 = vrot.lane.b32.xlu1 %v1120_v14, %s2145_s21  ;;  %v884_v1 = vmul.f32 %v2732_v30, %v2544_v58  ;;  %s1971_s21 = scalar_lea.vmem %s2838_s25, 64 }
 0x40d   : > { %v951_v32 = vcombine.low %v936_v53, %v938_v27  ;;  %v932_v59 = vmul.f32 %v2729_v56, %v836_v31  ;;  %v966_v38 = vrot.slane %v959_v25, %v2497_v35  ;;  %p1972_p11 = scmp.ne.s32.totalorder %s2838_s25, %s1971_s21 }
 0x40e   : > { %1173 = vrot.lane.b32.xlu0 %v2673_v33, %s2144_s17 }
 0x40f   : > { %v958_v26 = vrot.slane %v951_v32, %v2497_v35  ;;  %v789_v63 = vpop.permute.xlu1 %788  ;;  %v940_v61 = vadd.f32 %v932_v59, %v884_v1  ;;  %p1973_p8 = pnand %p1972_p11, %p3003_p2 }
 0x410   : > { %v838_v4 = vsel %vm830_vm2, %v789_v63, %v2660_v21  ;;  %1175 = vrot.lane.b32.xlu1 %v2710_v12, %s2144_s17  ;;  %v1195_v63 = vmul.f32 %v2593_v36, %v2638_v2  ;;  %s1311_s17 = scalar_lea.sflag [#allocation4], %s2462_s18 }
 0x411   : > { %v934_v7 = vmul.f32 %v2741_v39, %v838_v4  ;;  %v976_v42 = vcombine.high %v950_v50, %v958_v26  ;;  %v975_v9 = vcombine.low %v950_v50, %v958_v26  ;;  %v1193_v26 = vmul.f32 %v2581_v28, %v2626_v62  ;;  %p1974_p9 = pneg %p1973_p8 }
 0x413   : > { %v942_v6 = vadd.f32 %v934_v7, %v886_v44  ;;  %v990_v21 = vrot.slane %v976_v42, %v2504_v43  ;;  %v2762_v17 = vrot.slane %v975_v9, %v2504_v43  ;;  %v1194_v44 = vmul.f32 %v2590_v34, %v2690_v40 }
 0x414   : > { %v1196_v9 = vmul.f32 %v2609_v45, %v2697_v5 }
 0x415   : > { %v967_v11 = vcombine.low %v940_v61, %v942_v6 }
 0x417   : > { %v974_v58 = vrot.slane %v967_v11, %v2497_v35 }
 0x419   : > { %v992_v13 = vcombine.high %v966_v38, %v974_v58  ;;  %v991_v15 = vcombine.low %v966_v38, %v974_v58 }
 0x41b   : > { %v1006_v16 = vrot.slane %v992_v13, %v2504_v43  ;;  %v2765_v60 = vrot.slane %v991_v15, %v2504_v43 }
 0x41d   : > { %v1009_v55 = vcombine.low %v990_v21, %v1006_v16  ;;  %v1008_v54 = vcombine.high %v2762_v17, %v2765_v60  ;;  %v1010_v18 = vcombine.high %v990_v21, %v1006_v16  ;;  %v1007_v8 = vcombine.low %v2762_v17, %v2765_v60 }
 0x41e   : > { %v1197_v21 = vmul.f32 %v2612_v46, %v2665_v48  ;;  %v1605_v60 = vpack.c.bf16 %v2488_v22, %v2488_v22 }
 0x41f   : > { %1016 = vrot.lane.b32.xlu1 %v1009_v55, %s2147_s7  ;;  %1012 = vrot.lane.b32.xlu0 %v1008_v54, %s2148_s26  ;;  %v1199_v55 = vmul.f32 %v2673_v33, %v2679_v41 }
 0x423   : > { %1020 = vrot.lane.b32.xlu1 %v1010_v18, %s2149_s8 }
 0x464   : > { %v1162_v20 = vpop.permute.xlu0 %1161 }
 0x466   : > { %v1164_v23 = vpop.permute.xlu1 %1163 }
 0x468   : > { %v1166_v57 = vpop.permute.xlu0 %1165 }
 0x46a   : > { %v1168_v24 = vpop.permute.xlu1 %1167 }
 0x46c   : > { %v1170_v19 = vpop.permute.xlu0 %1169 }
 0x46e   : > { %v1172_v14 = vpop.permute.xlu1 %1171 }
 0x470   : > { %v1130_v53 = vpop.permute.xlu0 %1129 }
 0x471   : > { %v1185_v25 = vsel %vm830_vm2, %v1130_v53, %v1162_v20  ;;  %v1198_v20 = vmul.f32 %v2633_v0, %v2732_v30 }
 0x472   : > { %v1132_v27 = vpop.permute.xlu1 %1131  ;;  %v1201_v31 = vmul.f32 %v1185_v25, %v2619_v51 }
 0x473   : > { %v1186_v47 = vsel %vm830_vm2, %v1132_v27, %v1164_v23 }
 0x474   : > { %v1134_v32 = vpop.permute.xlu0 %1133  ;;  %v1202_v59 = vmul.f32 %v1186_v47, %v2682_v49  ;;  %v1209_v51 = vadd.f32 %v1201_v31, %v1193_v26 }
 0x475   : > { %v1187_v50 = vsel %vm830_vm2, %v1134_v32, %v1166_v57 }
 0x476   : > { %v1203_v1 = vmul.f32 %v1187_v50, %v2641_v3  ;;  %v1136_v4 = vpop.permute.xlu1 %1135  ;;  %v1210_v49 = vadd.f32 %v1202_v59, %v1194_v44 }
 0x477   : > { %v1188_v7 = vsel %vm830_vm2, %v1136_v4, %v1168_v24  ;;  %v1200_v24 = vmul.f32 %v2710_v12, %v2738_v37 }
 0x478   : > { %v1211_v42 = vadd.f32 %v1203_v1, %v1195_v63  ;;  %v1204_v28 = vmul.f32 %v1188_v7, %v2701_v10  ;;  %v1138_v62 = vpop.permute.xlu0 %1137 }
 0x479   : > { %v1189_v11 = vsel %vm830_vm2, %v1138_v62, %v1170_v19 }
 0x47a   : > { %v1217_v61 = vcombine.low %v1209_v51, %v1211_v42  ;;  %v1212_v6 = vadd.f32 %v1204_v28, %v1196_v9  ;;  %v1140_v36 = vpop.permute.xlu1 %1139  ;;  %v1205_v45 = vmul.f32 %v1189_v11, %v2670_v52 }
 0x47b   : > { %v1190_v58 = vsel %vm830_vm2, %v1140_v36, %v1172_v14 }
 0x47c   : > { %v1225_v2 = vcombine.low %v1210_v49, %v1212_v6  ;;  %v1142_v3 = vpop.permute.xlu0 %1141  ;;  %v1224_v34 = vrot.slane %v1217_v61, %v2497_v35  ;;  %v1206_v16 = vmul.f32 %v1190_v58, %v2729_v56  ;;  %v1213_v23 = vadd.f32 %v1205_v45, %v1197_v21 }
 0x47e   : > { %v1232_v40 = vrot.slane %v1225_v2, %v2497_v35  ;;  %v1144_v38 = vpop.permute.xlu1 %1143  ;;  %v1214_v48 = vadd.f32 %v1206_v16, %v1198_v20 }
 0x480   : > { %v1174_v5 = vpop.permute.xlu0 %1173  ;;  %v1250_v10 = vcombine.high %v1224_v34, %v1232_v40  ;;  %v1249_v13 = vcombine.low %v1224_v34, %v1232_v40 }
 0x481   : > { %v1191_v15 = vsel %vm830_vm2, %v1142_v3, %v1174_v5 }
 0x482   : > { %v1207_v54 = vmul.f32 %v1191_v15, %v2685_v29  ;;  %v1176_v18 = vpop.permute.xlu1 %1175  ;;  %v1264_v0 = vrot.slane %v1250_v10, %v2504_v43  ;;  %v1257_v25 = vrot.slane %v1249_v13, %v2504_v43 }
 0x483   : > { %v1192_v52 = vsel %vm830_vm2, %v1144_v38, %v1176_v18 }
 0x484   : > { %v1215_v57 = vadd.f32 %v1207_v54, %v1199_v55  ;;  %v1208_v46 = vmul.f32 %v1192_v52, %v2741_v39 }
 0x486   : > { %v1233_v56 = vcombine.low %v1213_v23, %v1215_v57  ;;  %v1216_v19 = vadd.f32 %v1208_v46, %v1200_v24 }
 0x488   : > { %v1241_v14 = vcombine.low %v1214_v48, %v1216_v19  ;;  %v1240_v33 = vrot.slane %v1233_v56, %v2497_v35 }
 0x48a   : > { %v1248_v41 = vrot.slane %v1241_v14, %v2497_v35 }
 0x48c   : > { %v1266_v29 = vcombine.high %v1240_v33, %v1248_v41  ;;  %v1265_v53 = vcombine.low %v1240_v33, %v1248_v41 }
 0x48e   : > { %v1280_v30 = vrot.slane %v1266_v29, %v2504_v43  ;;  %v1273_v12 = vrot.slane %v1265_v53, %v2504_v43 }
 0x490   : > { %v1284_v37 = vcombine.high %v1264_v0, %v1280_v30  ;;  %v1282_v39 = vcombine.high %v1257_v25, %v1273_v12  ;;  %v1283_v27 = vcombine.low %v1264_v0, %v1280_v30  ;;  %v1281_v47 = vcombine.low %v1257_v25, %v1273_v12 }
 0x491   : > { %v1013_v31 = vpop.permute.xlu0 %1012  ;;  %v1017_v32 = vpop.permute.xlu1 %1016 }
 0x492   : > { %v1024_v35 = vsel %vm1023_vm3, %v1007_v8, %v1013_v31  ;;  %1294 = vrot.lane.b32.xlu1 %v1284_v37, %s2149_s8  ;;  %1286 = vrot.lane.b32.xlu0 %v1282_v39, %s2148_s26 }
 0x493   : > { %v1026_v43 = vsel %vm1025_vm4, %v1024_v35, %v1017_v32 }
 0x495   : > { %v1021_v50 = vpop.permute.xlu1 %1020 }
 0x496   : > { %v1028_v26 = vsel %vm1027_vm5, %v1026_v43, %v1021_v50  ;;  %1290 = vrot.lane.b32.xlu0 %v1283_v27, %s2147_s7  ;;  %s2151_s7 = smov [#allocation14]  }
 0x497   : > { %v1029_v17 = vmul.f32 0.35355338, %v1028_v26  ;;  %s1975_s26 = sshll.u32 %s2151_s7, 4  ;;  %s1976_s26 = int_to_ptr.vmem [resolvable:$false] %s1975_s26 }
 0x498   : > { %s1977_s8 = scalar_lea.vmem %s1976_s26, 128  ;;  %p1978_p4 = scmp.lt.s32.totalorder %s2838_s25, %s1976_s26 }
 0x499   : > { %v1030_v8 = vpack.c.bf16 %v1029_v17, %v1029_v17  ;;  %p1979_p6 = scmp.lt.s32.totalorder %s1977_s8, %s1971_s21 }
 0x49a   : > { %1306 = vrot.lane.b32.xlu0 %v1605_v60, %s2150_s12 }
 0x49b   : > { %1032 = vst.msk [vmem:[%s463_s9] sm:$0xf] %vm1031_vm6, %v1030_v8  ;;  %p1980_p3 = por %p1979_p6, %p1978_p4 }
 0x49d   : > { %p1981_p1 = pnand %p1980_p3, %p1974_p9 }
 0x49f   : > { %1984 = shalt.err (!%p1981_p1)
}
 0x4a0   : > { %s1985_s18 = scalar_lea.hbm %s2836_s27, 64  ;;  %s1989_s20 = scalar_lea.hbm %s3002_s19, 128 }
 0x4a1   : > { %p1986_p12 = scmp.ne.s32.totalorder %s2836_s27, %s1985_s18  ;;  %p1990_p7 = scmp.lt.u32.totalorder %s2836_s27, %s3002_s19 }
 0x4a2   : > { %p1991_p10 = scmp.lt.u32.totalorder %s1989_s20, %s1985_s18  ;;  %p1993_p11 = scmp.lt.u32.totalorder %s1985_s18, %s2836_s27 }
 0x4a3   : > { %p1987_p0 = pnand %p1986_p12, %p3003_p2 }
 0x4a4   : > { %p1992_p13 = por %p1991_p10, %p1990_p7 }
 0x4a5   : > { %p1988_p5 = pneg %p1987_p0 }
 0x4a6   : > { %p1994_p8 = por %p1993_p11, %p1992_p13 }
 0x4a8   : > { %p1995_p9 = pnand %p1994_p8, %p1988_p5 }
 0x4aa   : > { %1998 = shalt.err (!%p1995_p9)
}
 0x4ab   : > { %1643 = dma.vmem_to_hbm [thread:$0]  (%p3003_p2), %s2838_s25, 64, %s2836_s27, %s1311_s17  }
 0x4ac   : > { %s1315_s21 = sand.u32 1, %s2235_s15   ;;  %s470_s26 = scalar_lea.vmem [#allocation15], %s2821_s24 }
 0x4ad   : > { %s1349_s8 = sshll.u32 %s470_s26, 4  ;;  %s477_s18 = scalar_lea.vmem [#allocation17], %s2821_s24  ;;  %s2875_s8 = int_to_ptr.vmem [resolvable:$true] %s1349_s8 }
 0x4ae   : > { %s1363_s9 = sshll.u32 %s477_s18, 4  ;;  %s3004_s25 = sld [smem:[#allocation29_spill]]  ;;  %s2883_s9 = int_to_ptr.vmem [resolvable:$true] %s1363_s9 }
 0x4af   : > { %s3005_s12 = sld [smem:[#allocation30_spill]]  ;;  %s2887_s24 = scalar_lea.sflag [#allocation16], %s1315_s21 }
 0x4b0   : > { %s1999_s16 = scalar_lea.vmem %s2875_s8, 64  ;;  %s2152_s20 = smov [#allocation15]  }
 0x4b1   : > { %p2000_p4 = scmp.ne.s32.totalorder %s2875_s8, %s1999_s16  ;;  %s2003_s0 = sshll.u32 %s2152_s20, 4  ;;  %s2004_s0 = int_to_ptr.vmem [resolvable:$false] %s2003_s0 }
 0x4b2   : > { %s2005_s2 = scalar_lea.vmem %s2004_s0, 128  ;;  %p2006_p1 = scmp.lt.s32.totalorder %s2875_s8, %s2004_s0 }
 0x4b3   : > { %p2001_p6 = pnand %p2000_p4, %p3003_p2  ;;  %p2007_p12 = scmp.lt.s32.totalorder %s2005_s2, %s1999_s16 }
 0x4b4   : > { %s2873_s27 = scalar_lea.hbm %s3004_s25, %s2827_s22 }
 0x4b5   : > { %s3006_s7 = smov %s3005_s12  ;;  %s2881_s29 = scalar_lea.hbm %s3005_s12, %s2827_s22 }
 0x4b6   : > { %p2002_p3 = pneg %p2001_p6  ;;  %p2008_p0 = por %p2007_p12, %p2006_p1 }
 0x4b8   : > { %p2009_p5 = pnand %p2008_p0, %p2002_p3 }
 0x504   : > { %v1287_v22 = vpop.permute.xlu0 %1286  ;;  %v1295_v1 = vpop.permute.xlu1 %1294 }
 0x505   : > { %v1297_v59 = vsel %vm1023_vm3, %v1281_v47, %v1287_v22 }
 0x508   : > { %v1291_v63 = vpop.permute.xlu0 %1290 }
 0x509   : > { %v1298_v4 = vsel %vm1025_vm4, %v1297_v59, %v1291_v63 }
 0x50a   : > { %v1299_v44 = vsel %vm1027_vm5, %v1298_v4, %v1295_v1 }
 0x50b   : > { %v1300_v7 = vpack.c.bf16 %v1299_v44, %v1299_v44 }
 0x50c   : > { %v1307_v51 = vpop.permute.xlu0 %1306 }
 0x50d   : > { %1309 = vst.msk [vmem:[%s477_s18] sm:$0xf] %vm1031_vm6, %v1307_v51  ;;  %1301 = vst.msk [vmem:[%s470_s26] sm:$0xf] %vm1031_vm6, %v1300_v7 }
 0x50e   : > { %2012 = shalt.err (!%p2009_p5)
}
 0x50f   : > { %s2013_s22 = scalar_lea.hbm %s2873_s27, 64  ;;  %s2017_s18 = scalar_lea.hbm %s3004_s25, 128 }
 0x510   : > { %p2014_p7 = scmp.ne.s32.totalorder %s2873_s27, %s2013_s22  ;;  %p2018_p11 = scmp.lt.u32.totalorder %s2873_s27, %s3004_s25 }
 0x511   : > { %p2019_p8 = scmp.lt.u32.totalorder %s2017_s18, %s2013_s22  ;;  %p2021_p4 = scmp.lt.u32.totalorder %s2013_s22, %s2873_s27 }
 0x512   : > { %p2015_p10 = pnand %p2014_p7, %p3003_p2 }
 0x513   : > { %p2020_p9 = por %p2019_p8, %p2018_p11 }
 0x514   : > { %p2016_p13 = pneg %p2015_p10 }
 0x515   : > { %p2022_p6 = por %p2021_p4, %p2020_p9 }
 0x517   : > { %p2023_p3 = pnand %p2022_p6, %p2016_p13 }
 0x519   : > { %2026 = shalt.err (!%p2023_p3)
}
 0x51a   : > { %1644 = dma.vmem_to_hbm [thread:$0]  (%p3003_p2), %s2875_s8, 64, %s2873_s27, %s2887_s24  }
 0x51b   : > { %s2027_s2 = scalar_lea.vmem %s2883_s9, 64  ;;  %s2153_s17 = smov [#allocation17]  }
 0x51c   : > { %p2028_p1 = scmp.ne.s32.totalorder %s2883_s9, %s2027_s2  ;;  %s2031_s12 = sshll.u32 %s2153_s17, 4  ;;  %s2032_s12 = int_to_ptr.vmem [resolvable:$false] %s2031_s12 }
 0x51d   : > { %s2033_s16 = scalar_lea.vmem %s2032_s12, 128  ;;  %p2034_p5 = scmp.lt.s32.totalorder %s2883_s9, %s2032_s12 }
 0x51e   : > { %p2029_p12 = pnand %p2028_p1, %p3003_p2  ;;  %p2035_p7 = scmp.lt.s32.totalorder %s2033_s16, %s2027_s2 }
 0x520   : > { %p2030_p0 = pneg %p2029_p12  ;;  %p2036_p10 = por %p2035_p7, %p2034_p5 }
 0x522   : > { %p2037_p13 = pnand %p2036_p10, %p2030_p0 }
 0x524   : > { %2040 = shalt.err (!%p2037_p13)
}
 0x525   : > { %s2041_s8 = scalar_lea.hbm %s2881_s29, 64  ;;  %s2045_s22 = scalar_lea.hbm %s3006_s7, 128 }
 0x526   : > { %p2042_p11 = scmp.ne.s32.totalorder %s2881_s29, %s2041_s8  ;;  %p2046_p4 = scmp.lt.u32.totalorder %s2881_s29, %s3006_s7 }
 0x527   : > { %p2047_p6 = scmp.lt.u32.totalorder %s2045_s22, %s2041_s8  ;;  %p2049_p1 = scmp.lt.u32.totalorder %s2041_s8, %s2881_s29 }
 0x528   : > { %p2043_p8 = pnand %p2042_p11, %p3003_p2 }
 0x529   : > { %p2048_p3 = por %p2047_p6, %p2046_p4 }
 0x52a   : > { %p2044_p9 = pneg %p2043_p8 }
 0x52b   : > { %p2050_p12 = por %p2049_p1, %p2048_p3 }
 0x52d   : > { %p2051_p0 = pnand %p2050_p12, %p2044_p9 }
 0x52f   : > { %2054 = shalt.err (!%p2051_p0)
}
 0x530   : > { %1645 = dma.vmem_to_hbm [thread:$0]  (%p3003_p2), %s2883_s9, 64, %s2881_s29, %s2887_s24  }
 0x531 PF: > { %s1375_s18 = sand.u32 1, %s2105_s30   ;;  %p3007_p5 = scmp.ne.s32.totalorder %s2992_s3, 0 }
 0x532   : > { %p3008_p7 = scmp.ge.s32.totalorder %s2125_s14, 2  ;;  %s1376_s15 = scalar_lea.sflag [#allocation4], %s1375_s18 }
 0x534   : > { %p1673_p10 = pnand %p3008_p7, %p3007_p5 }
 0x536   : > { %2096 = dma.done.wait (!%p1673_p10), %s1376_s15, 64  }
 0x537   : > { %2098 = vsyncadd (!%p1673_p10), %s1376_s15, 4294967232  ;;  %s3009_s0 = sadd.s32 4294967294, %s2125_s14  }
 0x538   : > { %s1384_s2 = sand.u32 1, %s3009_s0  }
 0x539   : > { %s1385_s17 = scalar_lea.sflag [#allocation16], %s1384_s2 }
 0x53a   : > { %2100 = dma.done.wait (!%p1673_p10), %s1385_s17, 128  }
 0x53b   : > { %2102 = vsyncadd (!%p1673_p10), %s1385_s17, 4294967168  ;;  %s32_s14 = sadd.s32 1, %s2125_s14   ;;  %s3010_s30 = smov %s2109_s10 }
 0x53c   : > { %p29_p2 = scmp.ge.s32.totalorder %s32_s14, 4   ;;  %s3011_s10 = smov %s2113_s11 }
 0x53d   : > { %s3012_s11 = smov %s2412_s1  ;;  %s3013_s12 = smov %s2121_s13 }
 0x53e   : > { %s3014_s13 = smov %s3016_s28  ;;  %31 = sbr.rel (!%p29_p2) target bundleno = 19 (0x13), region = 151 }
 0x545   :  { %1399 = vsyncpa [#allocation3], 1 }
 0x546   :  { %1401 = vsyncpa [#allocation3 + $0x1], 1 }
 0x547   :  { %1402 = vsyncpa [#allocation6], 1 }
 0x548   :  { %1403 = vsyncpa [#allocation9], 1 }
 0x549   :  { %1404 = vsyncpa [#allocation12], 1 }
 0x54a   :  { %1405 = vsyncpa [#allocation4], 1 }
 0x54b   :  { %1407 = vsyncpa [#allocation4 + $0x1], 1 }
 0x54c   :  { %1408 = vsyncpa [#allocation16], 1 }
 0x54d   :  { %1410 = vsyncpa [#allocation16 + $0x1], 1 }

</bundles_post_ra>
